<compile_context>
chip_gen: v7x
topology: tpu7x:2x2x1
jax: 0.10.0
libtpu: 0.0.40
codegen_flags: <defaults>
</compile_context>

<pallas_src>
import math
import jax
import jax.numpy as jnp
from jax.experimental import pallas as pl
from jax.experimental.pallas import tpu as pltpu


# ---------------------------------------------------------------------------
# Kernel: T teacher-forced decode steps in ONE pallas_call.
# ---------------------------------------------------------------------------
def luong_decoder_kernel(emb_ref, h0_ref, c0_ref, av0_ref, enc_ref,
                         w_g_ref, b_g_ref, w_a_ref, w_c_ref, b_c_ref,
                         w_o_ref, b_o_ref,
                         logp_ref, state_ref,
                         h_s, c_s, av_s):
    H = h0_ref.shape[1]
    t = pl.program_id(0)

    # Initialize the carried state (VMEM scratch persists across grid steps).
    @pl.when(t == 0)
    def _():
        h_s[...] = h0_ref[...]
        c_s[...] = c0_ref[...]
        av_s[...] = av0_ref[...]

    emb = emb_ref[0]                 # (B, E)  this step's embedded tokens
    h_prev = h_s[...]
    c_prev = c_s[...]
    av_prev = av_s[...]

    # ---- fused nn.LSTMCell: x = [embedded, attn_vector, h_prev] ----
    x = jnp.concatenate([emb, av_prev, h_prev], axis=1)                  # (B, E+2H)
    gates = jnp.dot(x, w_g_ref[...],
                    preferred_element_type=jnp.float32) + b_g_ref[...]   # (B, 4H)
    sig = jax.nn.sigmoid(gates)                  # one full-width EUP pass
    g_g = jnp.tanh(gates[:, 2 * H:3 * H])
    i_g = sig[:, 0:H]
    f_g = sig[:, H:2 * H]
    o_g = sig[:, 3 * H:4 * H]
    d_c = f_g * c_prev + i_g * g_g                                       # (B, H)
    d_h = o_g * jnp.tanh(d_c)                                            # (B, H)

    # ---- Attn(method='general'), tgt_len == 1 ----
    enc = enc_ref[...]                                                   # (B, S, H)
    h_proj = jnp.dot(d_h, w_a_ref[...],
                     preferred_element_type=jnp.float32)                 # (B, H)
    # VPU broadcast-multiply + reduce (no tiny batched dot_generals on the MXU)
    align = jnp.sum(h_proj[:, None, :] * enc, axis=-1)                   # (B, S)
    align = align - jnp.max(align, axis=1, keepdims=True)
    p = jnp.exp(align)
    attn_w = p / jnp.sum(p, axis=1, keepdims=True)                       # softmax over S
    context = jnp.sum(attn_w[:, :, None] * enc, axis=1)                  # (B, H)

    # ---- concat Linear + tanh ----
    concat_c = jnp.concatenate([context, d_h], axis=1)                   # (B, 2H)
    av_new = jnp.tanh(jnp.dot(concat_c, w_c_ref[...],
                              preferred_element_type=jnp.float32) + b_c_ref[...])

    # TODO(synk): nn.Dropout is identity in eval mode; training-mode dropout not implemented.
    # ---- output Linear + log_softmax (lane-padded; pad bias = -1e30) ----
    logits = jnp.dot(av_new, w_o_ref[...],
                     preferred_element_type=jnp.float32) + b_o_ref[...]  # (B, O_pad)
    m = jnp.max(logits, axis=1, keepdims=True)
    shifted = logits - m
    lse = jnp.log(jnp.sum(jnp.exp(shifted), axis=1, keepdims=True))
    logp_ref[0] = shifted - lse                                          # (B, O_pad)

    # carry state to the next step
    h_s[...] = d_h
    c_s[...] = d_c
    av_s[...] = av_new

    # lane-dense packed final state, written once on the last step (resident output)
    @pl.when(t == pl.num_programs(0) - 1)
    def _():
        packed = jnp.concatenate([d_h, d_c, av_new], axis=1)             # (B, 3H)
        pad = state_ref.shape[1] - packed.shape[1]
        if pad > 0:
            packed = jnp.concatenate(
                [packed, jnp.zeros((packed.shape[0], pad), jnp.float32)], axis=1)
        state_ref[...] = packed


# ---------------------------------------------------------------------------
# Parameters (PyTorch layout) + one-time host-side repack for the kernel.
# ---------------------------------------------------------------------------
def init_params(key, vocab, embed, hidden, out_size):
    ks = jax.random.split(key, 10)
    u = lambda k, shape, bound: jax.random.uniform(k, shape, jnp.float32, -bound, bound)
    kl = 1.0 / math.sqrt(hidden)
    kc = 1.0 / math.sqrt(2 * hidden)
    return {
        'embedding': jax.random.normal(ks[0], (vocab, embed), jnp.float32),
        'w_ih': u(ks[1], (4 * hidden, embed + hidden), kl),   # nn.LSTMCell layout
        'w_hh': u(ks[2], (4 * hidden, hidden), kl),
        'b_ih': u(ks[3], (1, 4 * hidden), kl),
        'b_hh': u(ks[4], (1, 4 * hidden), kl),
        'w_a':  u(ks[5], (hidden, hidden), kl),               # Attn 'general', no bias
        'w_c':  u(ks[6], (hidden, 2 * hidden), kc),
        'b_c':  u(ks[7], (1, hidden), kc),
        'w_o':  u(ks[8], (out_size, hidden), kl),
        'b_o':  u(ks[9], (1, out_size), kl),
    }


def pack_params(params):
    """Pre-transpose, fuse gate weights, and pad the output dim to 128 lanes."""
    H = params['w_hh'].shape[1]
    O = params['w_o'].shape[0]
    O_pad = ((O + 127) // 128) * 128
    w_gates = jnp.concatenate([params['w_ih'].T, params['w_hh'].T], axis=0)  # (E+2H, 4H)
    b_gates = params['b_ih'] + params['b_hh']                                # (1, 4H)
    w_o_t = params['w_o'].T                                                  # (H, O)
    b_o = params['b_o']
    if O_pad > O:
        w_o_t = jnp.concatenate([w_o_t, jnp.zeros((H, O_pad - O), jnp.float32)], axis=1)
        b_o = jnp.concatenate([b_o, jnp.full((1, O_pad - O), -1e30, jnp.float32)], axis=1)
    return {
        'w_gates': w_gates,            # (E+2H, 4H)
        'b_gates': b_gates,            # (1, 4H)
        'w_a_t': params['w_a'].T,      # (H, H)
        'w_c_t': params['w_c'].T,      # (2H, H)
        'b_c': params['b_c'],          # (1, H)
        'w_o_t': w_o_t,                # (H, O_pad)
        'b_o': b_o,                    # (1, O_pad)
        'o_real': O,
    }


# ---------------------------------------------------------------------------
# Wrappers
# ---------------------------------------------------------------------------
def luong_decoder_decode(params, packed, token_ids, last_hidden,
                         encoder_outputs, attn_vector):
    """Run T teacher-forced decode steps inside one pallas_call.

    token_ids       : (T, B) int32
    last_hidden     : (h0, c0), each (B, H)
    encoder_outputs : (S, B, H)
    attn_vector     : (B, H)
    Returns: log_probs (T, B, O), (d_h, d_c), attn_vector (final step values).
    """
    h0, c0 = last_hidden
    T, B = token_ids.shape
    H = h0.shape[1]
    E = params['embedding'].shape[1]
    S = encoder_outputs.shape[0]
    O = packed['o_real']
    O_pad = packed['w_o_t'].shape[1]
    state_w = ((3 * H + 127) // 128) * 128

    # One-time glue per call (not per step): embedding gather for all steps and
    # batch-major encoder layout.
    emb_all = jnp.take(params['embedding'], token_ids.reshape(-1), axis=0
                       ).reshape(T, B, E)
    enc_bsd = jnp.transpose(encoder_outputs, (1, 0, 2))          # (B, S, H)

    inputs = (emb_all, h0, c0, attn_vector, enc_bsd,
              packed['w_gates'], packed['b_gates'], packed['w_a_t'],
              packed['w_c_t'], packed['b_c'], packed['w_o_t'], packed['b_o'])

    const2 = lambda t: (0, 0)
    const3 = lambda t: (0, 0, 0)
    in_specs = [
        pl.BlockSpec((1, B, E), lambda t: (t, 0, 0)),     # per-step embeddings
        pl.BlockSpec((B, H), const2),                     # h0
        pl.BlockSpec((B, H), const2),                     # c0
        pl.BlockSpec((B, H), const2),                     # attn_vector_0
        pl.BlockSpec((B, S, H), const3),                  # encoder outputs (resident)
        pl.BlockSpec(packed['w_gates'].shape, const2),
        pl.BlockSpec(packed['b_gates'].shape, const2),
        pl.BlockSpec(packed['w_a_t'].shape, const2),
        pl.BlockSpec(packed['w_c_t'].shape, const2),
        pl.BlockSpec(packed['b_c'].shape, const2),
        pl.BlockSpec(packed['w_o_t'].shape, const2),
        pl.BlockSpec(packed['b_o'].shape, const2),
    ]
    out_specs = (
        pl.BlockSpec((1, B, O_pad), lambda t: (t, 0, 0)),  # lane-dense log-probs
        pl.BlockSpec((B, state_w), const2),                # packed final state
    )
    out_shapes = (
        jax.ShapeDtypeStruct((T, B, O_pad), jnp.float32),
        jax.ShapeDtypeStruct((B, state_w), jnp.float32),
    )

    fn = pl.pallas_call(
        luong_decoder_kernel,
        out_shape=out_shapes,
        grid_spec=pltpu.PrefetchScalarGridSpec(
            num_scalar_prefetch=0,
            grid=(T,),
            in_specs=in_specs,
            out_specs=out_specs,
            scratch_shapes=[pltpu.VMEM((B, H), jnp.float32),   # h carry
                            pltpu.VMEM((B, H), jnp.float32),   # c carry
                            pltpu.VMEM((B, H), jnp.float32)],  # attn_vector carry
        ),
        compiler_params=pltpu.CompilerParams(
            dimension_semantics=("arbitrary",)),
    )
    logp_pad, state = fn(*inputs)
    log_probs = logp_pad[:, :, :O]
    d_h = state[:, 0:H]
    d_c = state[:, H:2 * H]
    attn_vec = state[:, 2 * H:3 * H]
    return log_probs, (d_h, d_c), attn_vec


def luong_decoder_forward(params, packed, input_seq, last_hidden,
                          encoder_outputs, attn_vector):
    """Module-parity single decode step (LuongAttnDecoderRNN.forward)."""
    log_probs, (d_h, d_c), attn_vec = luong_decoder_decode(
        params, packed, input_seq[None, :], last_hidden, encoder_outputs, attn_vector)
    return log_probs[0], (d_h, d_c), attn_vec


# ---------------------------------------------------------------------------
# Pure-JAX reference (mirrors the PyTorch forward exactly, PyTorch weight layout)
# ---------------------------------------------------------------------------
def ref_forward(params, input_seq, last_hidden, encoder_outputs, attn_vector):
    hp = 'highest'
    h, c = last_hidden
    H = h.shape[1]
    embedded = params['embedding'][input_seq]
    emb_t = jnp.concatenate([embedded, attn_vector], axis=1)
    gates = (jnp.dot(emb_t, params['w_ih'].T, precision=hp)
             + jnp.dot(h, params['w_hh'].T, precision=hp)
             + params['b_ih'] + params['b_hh'])
    i = jax.nn.sigmoid(gates[:, :H])
    f = jax.nn.sigmoid(gates[:, H:2 * H])
    g = jnp.tanh(gates[:, 2 * H:3 * H])
    o = jax.nn.sigmoid(gates[:, 3 * H:4 * H])
    d_c = f * c + i * g
    d_h = o * jnp.tanh(d_c)
    enc_bsd = jnp.transpose(encoder_outputs, (1, 0, 2))
    h_proj = jnp.dot(d_h, params['w_a'].T, precision=hp)
    align = jnp.einsum('bd,bsd->bs', h_proj, enc_bsd, precision=hp)
    attn_w = jax.nn.softmax(align, axis=1)
    context = jnp.einsum('bs,bsd->bd', attn_w, enc_bsd, precision=hp)
    concat_c = jnp.concatenate([context, d_h], axis=1)
    av = jnp.tanh(jnp.dot(concat_c, params['w_c'].T, precision=hp) + params['b_c'])
    logits = jnp.dot(av, params['w_o'].T, precision=hp) + params['b_o']
    return jax.nn.log_softmax(logits, axis=1), (d_h, d_c), av


if __name__ == "__main__":
    B, E, H, S, O, V, T = 8, 32, 32, 8, 64, 50, 4

    key = jax.random.PRNGKey(0)
    kp, k1, k2, k3, k4, k5 = jax.random.split(key, 6)

    params = init_params(kp, V, E, H, O)
    packed = pack_params(params)

    token_ids = jax.random.randint(k1, (T, B), 0, V, dtype=jnp.int32)
    h0 = jax.random.normal(k2, (B, H), jnp.float32)
    c0 = jax.random.normal(k3, (B, H), jnp.float32)
    encoder_outputs = jax.random.normal(k4, (S, B, H), jnp.float32)  # (src_len, batch, hidden)
    attn_vector = jax.random.normal(k5, (B, H), jnp.float32)

    # --- multi-step decode (T steps fused into one pallas_call) ---
    log_probs, (d_h, d_c), new_av = luong_decoder_decode(
        params, packed, token_ids, (h0, c0), encoder_outputs, attn_vector)
    jax.block_until_ready((log_probs, d_h, d_c, new_av))

    # --- pure-JAX reference, stepped the same way ---
    ref_lp = []
    rh, rc, rav = h0, c0, attn_vector
    for t in range(T):
        lp, (rh, rc), rav = ref_forward(params, token_ids[t], (rh, rc),
                                        encoder_outputs, rav)
        ref_lp.append(lp)
    ref_lp = jnp.stack(ref_lp, axis=0)

    assert log_probs.shape == (T, B, O)
    assert d_h.shape == (B, H) and d_c.shape == (B, H) and new_av.shape == (B, H)
    # log_softmax rows must sum (in prob space) to ~1
    assert bool(jnp.all(jnp.abs(jnp.sum(jnp.exp(log_probs), axis=-1) - 1.0) < 1e-4))
    assert bool(jnp.allclose(log_probs, ref_lp, atol=3e-3, rtol=3e-3))
    assert bool(jnp.allclose(d_h, rh, atol=3e-3, rtol=3e-3))
    assert bool(jnp.allclose(d_c, rc, atol=3e-3, rtol=3e-3))
    assert bool(jnp.allclose(new_av, rav, atol=3e-3, rtol=3e-3))

    # --- module-parity single-step forward (T == 1) ---
    lp1, (h1, c1), av1 = luong_decoder_forward(
        params, packed, token_ids[0], (h0, c0), encoder_outputs, attn_vector)
    jax.block_until_ready((lp1, h1, c1, av1))
    r_lp1, (r_h1, r_c1), r_av1 = ref_forward(
        params, token_ids[0], (h0, c0), encoder_outputs, attn_vector)
    assert bool(jnp.allclose(lp1, r_lp1, atol=3e-3, rtol=3e-3))
    assert bool(jnp.allclose(h1, r_h1, atol=3e-3, rtol=3e-3))
    assert bool(jnp.allclose(av1, r_av1, atol=3e-3, rtol=3e-3))

    print("KERNEL_OK")
</pallas_src>

<mosaic_0001>
module attributes {stable_mosaic.version = 11 : i64} {
  func.func @luong_decoder_kernel(%arg0: i32, %arg1: memref<1x8x32xf32, #tpu.memory_space<vmem>>, %arg2: memref<8x32xf32, #tpu.memory_space<vmem>>, %arg3: memref<8x32xf32, #tpu.memory_space<vmem>>, %arg4: memref<8x32xf32, #tpu.memory_space<vmem>>, %arg5: memref<8x8x32xf32, #tpu.memory_space<vmem>>, %arg6: memref<96x128xf32, #tpu.memory_space<vmem>>, %arg7: memref<1x128xf32, #tpu.memory_space<vmem>>, %arg8: memref<32x32xf32, #tpu.memory_space<vmem>>, %arg9: memref<64x32xf32, #tpu.memory_space<vmem>>, %arg10: memref<1x32xf32, #tpu.memory_space<vmem>>, %arg11: memref<32x128xf32, #tpu.memory_space<vmem>>, %arg12: memref<1x128xf32, #tpu.memory_space<vmem>>, %arg13: memref<1x8x128xf32, #tpu.memory_space<vmem>>, %arg14: memref<8x128xf32, #tpu.memory_space<vmem>>, %arg15: memref<8x32xf32, #tpu.memory_space<vmem>>, %arg16: memref<8x32xf32, #tpu.memory_space<vmem>>, %arg17: memref<8x32xf32, #tpu.memory_space<vmem>>) attributes {dimension_semantics = [#tpu.dimension_semantics<arbitrary>], iteration_bounds = array<i64: 4>, scalar_prefetch = 0 : i64, scratch_operands = 3 : i64, tpu.core_type = #tpu.core_type<tc>, window_params = [{transform_indices = @transform_0, window_bounds = array<i64: 1, 8, 32>}, {pipeline_mode = #tpu.pipeline_mode<synchronous>, transform_indices = @transform_1, window_bounds = array<i64: 8, 32>}, {pipeline_mode = #tpu.pipeline_mode<synchronous>, transform_indices = @transform_2, window_bounds = array<i64: 8, 32>}, {pipeline_mode = #tpu.pipeline_mode<synchronous>, transform_indices = @transform_3, window_bounds = array<i64: 8, 32>}, {pipeline_mode = #tpu.pipeline_mode<synchronous>, transform_indices = @transform_4, window_bounds = array<i64: 8, 8, 32>}, {pipeline_mode = #tpu.pipeline_mode<synchronous>, transform_indices = @transform_5, window_bounds = array<i64: 96, 128>}, {pipeline_mode = #tpu.pipeline_mode<synchronous>, transform_indices = @transform_6, window_bounds = array<i64: 1, 128>}, {pipeline_mode = #tpu.pipeline_mode<synchronous>, transform_indices = @transform_7, window_bounds = array<i64: 32, 32>}, {pipeline_mode = #tpu.pipeline_mode<synchronous>, transform_indices = @transform_8, window_bounds = array<i64: 64, 32>}, {pipeline_mode = #tpu.pipeline_mode<synchronous>, transform_indices = @transform_9, window_bounds = array<i64: 1, 32>}, {pipeline_mode = #tpu.pipeline_mode<synchronous>, transform_indices = @transform_10, window_bounds = array<i64: 32, 128>}, {pipeline_mode = #tpu.pipeline_mode<synchronous>, transform_indices = @transform_11, window_bounds = array<i64: 1, 128>}, {transform_indices = @transform_12, window_bounds = array<i64: 1, 8, 128>}, {pipeline_mode = #tpu.pipeline_mode<synchronous>, transform_indices = @transform_13, window_bounds = array<i64: 8, 128>}]} {
    %c0_i32 = arith.constant 0 : i32
    %0 = arith.cmpi eq, %arg0, %c0_i32 : i32
    %1 = arith.extui %0 : i1 to i32
    %c0_i32_0 = arith.constant 0 : i32
    %2 = arith.cmpi ne, %1, %c0_i32_0 : i32
    scf.if %2 {
      %c0_46 = arith.constant 0 : index
      %c0_47 = arith.constant 0 : index
      %80 = vector.load %arg2[%c0_46, %c0_47] : memref<8x32xf32, #tpu.memory_space<vmem>>, vector<8x32xf32>
      %c0_48 = arith.constant 0 : index
      %c0_49 = arith.constant 0 : index
      %81 = vector.load %arg15[%c0_48, %c0_49] : memref<8x32xf32, #tpu.memory_space<vmem>>, vector<8x32xf32>
      tpu.vector_store %arg15[%c0_48, %c0_49], %80 {strides = array<i32>} : memref<8x32xf32, #tpu.memory_space<vmem>>, vector<8x32xf32>,
      %c0_50 = arith.constant 0 : index
      %c0_51 = arith.constant 0 : index
      %82 = vector.load %arg3[%c0_50, %c0_51] : memref<8x32xf32, #tpu.memory_space<vmem>>, vector<8x32xf32>
      %c0_52 = arith.constant 0 : index
      %c0_53 = arith.constant 0 : index
      %83 = vector.load %arg16[%c0_52, %c0_53] : memref<8x32xf32, #tpu.memory_space<vmem>>, vector<8x32xf32>
      tpu.vector_store %arg16[%c0_52, %c0_53], %82 {strides = array<i32>} : memref<8x32xf32, #tpu.memory_space<vmem>>, vector<8x32xf32>,
      %c0_54 = arith.constant 0 : index
      %c0_55 = arith.constant 0 : index
      %84 = vector.load %arg4[%c0_54, %c0_55] : memref<8x32xf32, #tpu.memory_space<vmem>>, vector<8x32xf32>
      %c0_56 = arith.constant 0 : index
      %c0_57 = arith.constant 0 : index
      %85 = vector.load %arg17[%c0_56, %c0_57] : memref<8x32xf32, #tpu.memory_space<vmem>>, vector<8x32xf32>
      tpu.vector_store %arg17[%c0_56, %c0_57], %84 {strides = array<i32>} : memref<8x32xf32, #tpu.memory_space<vmem>>, vector<8x32xf32>,
    } else {
    }
    %c0 = arith.constant 0 : index
    %c0_1 = arith.constant 0 : index
    %c0_2 = arith.constant 0 : index
    %3 = vector.load %arg1[%c0, %c0_1, %c0_2] : memref<1x8x32xf32, #tpu.memory_space<vmem>>, vector<1x8x32xf32>
    %4 = vector.shape_cast %3 : vector<1x8x32xf32> to vector<8x32xf32>
    %c0_3 = arith.constant 0 : index
    %c0_4 = arith.constant 0 : index
    %5 = vector.load %arg15[%c0_3, %c0_4] : memref<8x32xf32, #tpu.memory_space<vmem>>, vector<8x32xf32>
    %c0_5 = arith.constant 0 : index
    %c0_6 = arith.constant 0 : index
    %6 = vector.load %arg16[%c0_5, %c0_6] : memref<8x32xf32, #tpu.memory_space<vmem>>, vector<8x32xf32>
    %c0_7 = arith.constant 0 : index
    %c0_8 = arith.constant 0 : index
    %7 = vector.load %arg17[%c0_7, %c0_8] : memref<8x32xf32, #tpu.memory_space<vmem>>, vector<8x32xf32>
    %8 = tpu.concatenate %4, %7, %5 in 1 : vector<8x32xf32>, vector<8x32xf32>, vector<8x32xf32> -> vector<8x96xf32>
    %c0_9 = arith.constant 0 : index
    %c0_10 = arith.constant 0 : index
    %9 = vector.load %arg6[%c0_9, %c0_10] : memref<96x128xf32, #tpu.memory_space<vmem>>, vector<96x128xf32>
    %cst = arith.constant dense<0.000000e+00> : vector<8x128xf32>
    %10 = tpu.matmul %8, %9, %cst {dimension_numbers = #tpu.dot_dimension_numbers<[1], [0], [0], [1], [0, 0, 1, 1], [], []>} : vector<8x96xf32>, vector<96x128xf32>, vector<8x128xf32> -> vector<8x128xf32>
    %c0_11 = arith.constant 0 : index
    %c0_12 = arith.constant 0 : index
    %11 = vector.load %arg7[%c0_11, %c0_12] : memref<1x128xf32, #tpu.memory_space<vmem>>, vector<1x128xf32>
    %12 = vector.broadcast %11 : vector<1x128xf32> to vector<8x128xf32>
    %13 = arith.addf %10, %12 : vector<8x128xf32>
    %14 = arith.negf %13 : vector<8x128xf32>
    %15 = math.exp %14 : vector<8x128xf32>
    %cst_13 = arith.constant 1.000000e+00 : f32
    %16 = vector.broadcast %cst_13 : f32 to vector<8x128xf32>
    %17 = arith.addf %16, %15 : vector<8x128xf32>
    %18 = arith.divf %16, %17 : vector<8x128xf32>
    %19 = vector.extract_strided_slice %13 {offsets = [0, 64], sizes = [8, 32], strides = [1, 1]} : vector<8x128xf32> to vector<8x32xf32>
    %20 = math.tanh %19 : vector<8x32xf32>
    %21 = vector.extract_strided_slice %18 {offsets = [0, 0], sizes = [8, 32], strides = [1, 1]} : vector<8x128xf32> to vector<8x32xf32>
    %22 = vector.extract_strided_slice %18 {offsets = [0, 32], sizes = [8, 32], strides = [1, 1]} : vector<8x128xf32> to vector<8x32xf32>
    %23 = vector.extract_strided_slice %18 {offsets = [0, 96], sizes = [8, 32], strides = [1, 1]} : vector<8x128xf32> to vector<8x32xf32>
    %24 = arith.mulf %22, %6 : vector<8x32xf32>
    %25 = arith.mulf %21, %20 : vector<8x32xf32>
    %26 = arith.addf %24, %25 : vector<8x32xf32>
    %27 = math.tanh %26 : vector<8x32xf32>
    %28 = arith.mulf %23, %27 : vector<8x32xf32>
    %c0_14 = arith.constant 0 : index
    %c0_15 = arith.constant 0 : index
    %c0_16 = arith.constant 0 : index
    %29 = vector.load %arg5[%c0_14, %c0_15, %c0_16] : memref<8x8x32xf32, #tpu.memory_space<vmem>>, vector<8x8x32xf32>
    %c0_17 = arith.constant 0 : index
    %c0_18 = arith.constant 0 : index
    %30 = vector.load %arg8[%c0_17, %c0_18] : memref<32x32xf32, #tpu.memory_space<vmem>>, vector<32x32xf32>
    %cst_19 = arith.constant dense<0.000000e+00> : vector<8x32xf32>
    %31 = tpu.matmul %28, %30, %cst_19 {dimension_numbers = #tpu.dot_dimension_numbers<[1], [0], [0], [1], [0, 0, 1, 1], [], []>} : vector<8x32xf32>, vector<32x32xf32>, vector<8x32xf32> -> vector<8x32xf32>
    %32 = vector.shape_cast %31 : vector<8x32xf32> to vector<8x1x32xf32>
    %33 = vector.broadcast %32 : vector<8x1x32xf32> to vector<8x8x32xf32>
    %34 = arith.mulf %33, %29 : vector<8x8x32xf32>
    %cst_20 = arith.constant dense<0.000000e+00> : vector<8x8xf32>
    %35 = vector.multi_reduction <add>, %34, %cst_20 [2] : vector<8x8x32xf32> to vector<8x8xf32>
    %cst_21 = arith.constant dense<0xFF800000> : vector<8xf32>
    %36 = vector.multi_reduction <maximumf>, %35, %cst_21 [1] : vector<8x8xf32> to vector<8xf32>
    %37 = vector.shape_cast %36 : vector<8xf32> to vector<8x1xf32>
    %38 = vector.broadcast %37 : vector<8x1xf32> to vector<8x8xf32>
    %39 = arith.subf %35, %38 : vector<8x8xf32>
    %40 = math.exp %39 : vector<8x8xf32>
    %cst_22 = arith.constant dense<0.000000e+00> : vector<8xf32>
    %41 = vector.multi_reduction <add>, %40, %cst_22 [1] : vector<8x8xf32> to vector<8xf32>
    %42 = vector.shape_cast %41 : vector<8xf32> to vector<8x1xf32>
    %43 = vector.broadcast %42 : vector<8x1xf32> to vector<8x8xf32>
    %44 = arith.divf %40, %43 : vector<8x8xf32>
    %45 = vector.shape_cast %44 : vector<8x8xf32> to vector<8x8x1xf32>
    %46 = vector.broadcast %45 : vector<8x8x1xf32> to vector<8x8x32xf32>
    %47 = arith.mulf %46, %29 : vector<8x8x32xf32>
    %cst_23 = arith.constant dense<0.000000e+00> : vector<8x32xf32>
    %48 = vector.multi_reduction <add>, %47, %cst_23 [1] : vector<8x8x32xf32> to vector<8x32xf32>
    %49 = tpu.concatenate %48, %28 in 1 : vector<8x32xf32>, vector<8x32xf32> -> vector<8x64xf32>
    %c0_24 = arith.constant 0 : index
    %c0_25 = arith.constant 0 : index
    %50 = vector.load %arg9[%c0_24, %c0_25] : memref<64x32xf32, #tpu.memory_space<vmem>>, vector<64x32xf32>
    %cst_26 = arith.constant dense<0.000000e+00> : vector<8x32xf32>
    %51 = tpu.matmul %49, %50, %cst_26 {dimension_numbers = #tpu.dot_dimension_numbers<[1], [0], [0], [1], [0, 0, 1, 1], [], []>} : vector<8x64xf32>, vector<64x32xf32>, vector<8x32xf32> -> vector<8x32xf32>
    %c0_27 = arith.constant 0 : index
    %c0_28 = arith.constant 0 : index
    %52 = vector.load %arg10[%c0_27, %c0_28] : memref<1x32xf32, #tpu.memory_space<vmem>>, vector<1x32xf32>
    %53 = vector.broadcast %52 : vector<1x32xf32> to vector<8x32xf32>
    %54 = arith.addf %51, %53 : vector<8x32xf32>
    %55 = math.tanh %54 : vector<8x32xf32>
    %c0_29 = arith.constant 0 : index
    %c0_30 = arith.constant 0 : index
    %56 = vector.load %arg11[%c0_29, %c0_30] : memref<32x128xf32, #tpu.memory_space<vmem>>, vector<32x128xf32>
    %cst_31 = arith.constant dense<0.000000e+00> : vector<8x128xf32>
    %57 = tpu.matmul %55, %56, %cst_31 {dimension_numbers = #tpu.dot_dimension_numbers<[1], [0], [0], [1], [0, 0, 1, 1], [], []>} : vector<8x32xf32>, vector<32x128xf32>, vector<8x128xf32> -> vector<8x128xf32>
    %c0_32 = arith.constant 0 : index
    %c0_33 = arith.constant 0 : index
    %58 = vector.load %arg12[%c0_32, %c0_33] : memref<1x128xf32, #tpu.memory_space<vmem>>, vector<1x128xf32>
    %59 = vector.broadcast %58 : vector<1x128xf32> to vector<8x128xf32>
    %60 = arith.addf %57, %59 : vector<8x128xf32>
    %cst_34 = arith.constant dense<0xFF800000> : vector<8xf32>
    %61 = vector.multi_reduction <maximumf>, %60, %cst_34 [1] : vector<8x128xf32> to vector<8xf32>
    %62 = vector.shape_cast %61 : vector<8xf32> to vector<8x1xf32>
    %63 = vector.broadcast %62 : vector<8x1xf32> to vector<8x128xf32>
    %64 = arith.subf %60, %63 : vector<8x128xf32>
    %65 = math.exp %64 : vector<8x128xf32>
    %cst_35 = arith.constant dense<0.000000e+00> : vector<8xf32>
    %66 = vector.multi_reduction <add>, %65, %cst_35 [1] : vector<8x128xf32> to vector<8xf32>
    %67 = vector.shape_cast %66 : vector<8xf32> to vector<8x1xf32>
    %68 = math.log %67 : vector<8x1xf32>
    %69 = vector.broadcast %68 : vector<8x1xf32> to vector<8x128xf32>
    %70 = arith.subf %64, %69 : vector<8x128xf32>
    %c0_36 = arith.constant 0 : index
    %c0_37 = arith.constant 0 : index
    %c0_38 = arith.constant 0 : index
    %71 = vector.load %arg13[%c0_36, %c0_37, %c0_38] : memref<1x8x128xf32, #tpu.memory_space<vmem>>, vector<1x8x128xf32>
    %72 = vector.shape_cast %71 : vector<1x8x128xf32> to vector<8x128xf32>
    %73 = vector.shape_cast %70 : vector<8x128xf32> to vector<1x8x128xf32>
    tpu.vector_store %arg13[%c0_36, %c0_37, %c0_38], %73 {strides = array<i32>} : memref<1x8x128xf32, #tpu.memory_space<vmem>>, vector<1x8x128xf32>,
    %c0_39 = arith.constant 0 : index
    %c0_40 = arith.constant 0 : index
    %74 = vector.load %arg15[%c0_39, %c0_40] : memref<8x32xf32, #tpu.memory_space<vmem>>, vector<8x32xf32>
    tpu.vector_store %arg15[%c0_39, %c0_40], %28 {strides = array<i32>} : memref<8x32xf32, #tpu.memory_space<vmem>>, vector<8x32xf32>,
    %c0_41 = arith.constant 0 : index
    %c0_42 = arith.constant 0 : index
    %75 = vector.load %arg16[%c0_41, %c0_42] : memref<8x32xf32, #tpu.memory_space<vmem>>, vector<8x32xf32>
    tpu.vector_store %arg16[%c0_41, %c0_42], %26 {strides = array<i32>} : memref<8x32xf32, #tpu.memory_space<vmem>>, vector<8x32xf32>,
    %c0_43 = arith.constant 0 : index
    %c0_44 = arith.constant 0 : index
    %76 = vector.load %arg17[%c0_43, %c0_44] : memref<8x32xf32, #tpu.memory_space<vmem>>, vector<8x32xf32>
    tpu.vector_store %arg17[%c0_43, %c0_44], %55 {strides = array<i32>} : memref<8x32xf32, #tpu.memory_space<vmem>>, vector<8x32xf32>,
    %c3_i32 = arith.constant 3 : i32
    %77 = arith.cmpi eq, %arg0, %c3_i32 : i32
    %78 = arith.extui %77 : i1 to i32
    %c0_i32_45 = arith.constant 0 : i32
    %79 = arith.cmpi ne, %78, %c0_i32_45 : i32
    scf.if %79 {
      %80 = tpu.concatenate %28, %26, %55 in 1 : vector<8x32xf32>, vector<8x32xf32>, vector<8x32xf32> -> vector<8x96xf32>
      %cst_46 = arith.constant 0.000000e+00 : f32
      %81 = vector.broadcast %cst_46 : f32 to vector<8x32xf32>
      %82 = tpu.concatenate %80, %81 in 1 : vector<8x96xf32>, vector<8x32xf32> -> vector<8x128xf32>
      %c0_47 = arith.constant 0 : index
      %c0_48 = arith.constant 0 : index
      %83 = vector.load %arg14[%c0_47, %c0_48] : memref<8x128xf32, #tpu.memory_space<vmem>>, vector<8x128xf32>
      tpu.vector_store %arg14[%c0_47, %c0_48], %82 {strides = array<i32>} : memref<8x128xf32, #tpu.memory_space<vmem>>, vector<8x128xf32>,
    } else {
    }
    return
  }
  func.func @transform_0(%arg0: i32) -> (i32, i32, i32) {
    %c0_i32 = arith.constant 0 : i32
    %c0_i32_0 = arith.constant 0 : i32
    %c0_i32_1 = arith.constant 0 : i32
    return %arg0, %c0_i32, %c0_i32_0 : i32, i32, i32
  }
  func.func @transform_1(%arg0: i32) -> (i32, i32) {
    %c0_i32 = arith.constant 0 : i32
    %c0_i32_0 = arith.constant 0 : i32
    %c0_i32_1 = arith.constant 0 : i32
    return %c0_i32, %c0_i32_0 : i32, i32
  }
  func.func @transform_2(%arg0: i32) -> (i32, i32) {
    %c0_i32 = arith.constant 0 : i32
    %c0_i32_0 = arith.constant 0 : i32
    %c0_i32_1 = arith.constant 0 : i32
    return %c0_i32, %c0_i32_0 : i32, i32
  }
  func.func @transform_3(%arg0: i32) -> (i32, i32) {
    %c0_i32 = arith.constant 0 : i32
    %c0_i32_0 = arith.constant 0 : i32
    %c0_i32_1 = arith.constant 0 : i32
    return %c0_i32, %c0_i32_0 : i32, i32
  }
  func.func @transform_4(%arg0: i32) -> (i32, i32, i32) {
    %c0_i32 = arith.constant 0 : i32
    %c0_i32_0 = arith.constant 0 : i32
    %c0_i32_1 = arith.constant 0 : i32
    %c0_i32_2 = arith.constant 0 : i32
    return %c0_i32, %c0_i32_0, %c0_i32_1 : i32, i32, i32
  }
  func.func @transform_5(%arg0: i32) -> (i32, i32) {
    %c0_i32 = arith.constant 0 : i32
    %c0_i32_0 = arith.constant 0 : i32
    %c0_i32_1 = arith.constant 0 : i32
    return %c0_i32, %c0_i32_0 : i32, i32
  }
  func.func @transform_6(%arg0: i32) -> (i32, i32) {
    %c0_i32 = arith.constant 0 : i32
    %c0_i32_0 = arith.constant 0 : i32
    %c0_i32_1 = arith.constant 0 : i32
    return %c0_i32, %c0_i32_0 : i32, i32
  }
  func.func @transform_7(%arg0: i32) -> (i32, i32) {
    %c0_i32 = arith.constant 0 : i32
    %c0_i32_0 = arith.constant 0 : i32
    %c0_i32_1 = arith.constant 0 : i32
    return %c0_i32, %c0_i32_0 : i32, i32
  }
  func.func @transform_8(%arg0: i32) -> (i32, i32) {
    %c0_i32 = arith.constant 0 : i32
    %c0_i32_0 = arith.constant 0 : i32
    %c0_i32_1 = arith.constant 0 : i32
    return %c0_i32, %c0_i32_0 : i32, i32
  }
  func.func @transform_9(%arg0: i32) -> (i32, i32) {
    %c0_i32 = arith.constant 0 : i32
    %c0_i32_0 = arith.constant 0 : i32
    %c0_i32_1 = arith.constant 0 : i32
    return %c0_i32, %c0_i32_0 : i32, i32
  }
  func.func @transform_10(%arg0: i32) -> (i32, i32) {
    %c0_i32 = arith.constant 0 : i32
    %c0_i32_0 = arith.constant 0 : i32
    %c0_i32_1 = arith.constant 0 : i32
    return %c0_i32, %c0_i32_0 : i32, i32
  }
  func.func @transform_11(%arg0: i32) -> (i32, i32) {
    %c0_i32 = arith.constant 0 : i32
    %c0_i32_0 = arith.constant 0 : i32
    %c0_i32_1 = arith.constant 0 : i32
    return %c0_i32, %c0_i32_0 : i32, i32
  }
  func.func @transform_12(%arg0: i32) -> (i32, i32, i32) {
    %c0_i32 = arith.constant 0 : i32
    %c0_i32_0 = arith.constant 0 : i32
    %c0_i32_1 = arith.constant 0 : i32
    return %arg0, %c0_i32, %c0_i32_0 : i32, i32, i32
  }
  func.func @transform_13(%arg0: i32) -> (i32, i32) {
    %c0_i32 = arith.constant 0 : i32
    %c0_i32_0 = arith.constant 0 : i32
    %c0_i32_1 = arith.constant 0 : i32
    return %c0_i32, %c0_i32_0 : i32, i32
  }
}

</mosaic_0001>

<bundles_post_ra>
// kernel: tpu_custom_call.1
= control target key start
LH: loop header
LB: loop body
LE: loop exit
PB: predicated region body
PF: predicated region fallthrough
CT: control target
= control target key end

     0   :  { %s2967_s0 = inlined_call_operand.hbm [shape: f32[4,8,32], index: 0, kind: input, shape index: {}]   ;;  %s2968_s1 = inlined_call_operand.hbm [shape: f32[8,32], index: 1, kind: input, shape index: {}]   ;;  %s2969_s2 = inlined_call_operand.hbm [shape: f32[8,32], index: 2, kind: input, shape index: {}]   ;;  %s2970_s3 = inlined_call_operand.hbm [shape: f32[8,32], index: 3, kind: input, shape index: {}]   ;;  %s2971_s4 = inlined_call_operand.hbm [shape: f32[8,8,32], index: 4, kind: input, shape index: {}]   ;;  %s2972_s5 = inlined_call_operand.vmem [shape: f32[96,128], index: 5, kind: input, shape index: {}]   ;;  %s2973_s6 = inlined_call_operand.vmem [shape: f32[1,128], index: 6, kind: input, shape index: {}]   ;;  %s2974_s7 = inlined_call_operand.hbm [shape: f32[32,32], index: 7, kind: input, shape index: {}]   ;;  %s2975_s8 = inlined_call_operand.vmem [shape: f32[64,32], index: 8, kind: input, shape index: {}]   ;;  %s2976_s9 = inlined_call_operand.vmem [shape: f32[1,32], index: 9, kind: input, shape index: {}]   ;;  %s2977_s10 = inlined_call_operand.vmem [shape: f32[32,128], index: 10, kind: input, shape index: {}]   ;;  %s2978_s11 = inlined_call_operand.vmem [shape: f32[1,128], index: 11, kind: input, shape index: {}]   ;;  %s2979_s12 = inlined_call_operand.hbm [shape: f32[4,8,128], index: 12, kind: output, shape index: {0}]   ;;  %s2980_s13 = inlined_call_operand.hbm [shape: f32[8,128], index: 13, kind: output, shape index: {1}]  }
   0x1   :  { %2987 = sst [smem:[#allocation25_spill]] %s2968_s1 }
   0x2   :  { %2988 = sst [smem:[#allocation26_spill]] %s2976_s9 }
   0x3   :  { %2989 = sst [smem:[#allocation27_spill]] %s2978_s11 }
   0x4   :  { %2990 = sst [smem:[#allocation28_spill]] %s2979_s12 }
   0x5   :  { %2991 = sst [smem:[#allocation29_spill]] %s2980_s13 }
   0x6   :  { %19 = vsyncpa [#allocation6], 0 }
   0x7   :  { %21 = vsyncpa [#allocation6 + $0x1], 0 }
   0x8   :  { %22 = vsyncpa [#allocation9], 0 }
   0x9   :  { %23 = vsyncpa [#allocation12], 0 }
   0xa   :  { %24 = vsyncpa [#allocation15], 0 }
   0xb   :  { %25 = vsyncpa [#allocation7], 0 }
   0xc   :  { %27 = vsyncpa [#allocation7 + $0x1], 0 }
   0xd   :  { %28 = vsyncpa [#allocation18], 0  ;;  %s2326_s25 = smov 0   ;;  %s2328_s26 = smov 0  }
   0xe   :  { %s2330_s27 = smov 0   ;;  %s2332_s28 = smov 0  }
   0xf LB: > { %s2237_s29 = smov [#allocation8]   ;;  %s2347_s14 = sadd.s32 4294967295, %s2235_s28   ;;  %s2235_s28 = sphi %s2332_s28, %s3022_s28   ;;  %s2231_s27 = sphi %s2330_s27, %s3021_s27   ;;  %s2227_s26 = sphi %s2328_s26, %s3020_s26   ;;  %s2223_s25 = sphi %s2326_s25, %s3019_s25  }
  0x10   : > { %s356_s30 = sshll.u32 %s2237_s29, 4  ;;  %p1619_p0 = scmp.ge.s32.totalorder %s2235_s28, 1  ;;  %s2353_s30 = int_to_ptr.vmem [resolvable:$true] %s356_s30 }
  0x11   : > { %p2983_p1 = scmp.eq.s32.totalorder %s2347_s14, 0  ;;  %p343_p2 = scmp.lt.s32.totalorder %s2235_s28, 5 }
  0x12   : > { %s2238_s16 = smov [#allocation11]   ;;  %s2239_s18 = smov [#allocation10]  }
  0x13   : > { %p2355_p4 = pnand %p1619_p0, %p343_p2  ;;  %s378_s17 = sshll.u32 %s2238_s16, 4  ;;  %s2361_s17 = int_to_ptr.vmem [resolvable:$true] %s378_s17 }
  0x14   : > { %s367_s19 = sshll.u32 %s2239_s18, 4  ;;  %s2240_s21 = smov [#allocation13]   ;;  %s2369_s19 = int_to_ptr.vmem [resolvable:$true] %s367_s19 }
  0x15   : > { %s2992_s15 = scalar_select %p2355_p4, 1, 0 }
  0x16   : > { %p1822_p5 = pneg %p2355_p4  ;;  %s2371_s22 = sshll.u32 %s2240_s21, 4  ;;  %s389_s22 = int_to_ptr.vmem [resolvable:$true] %s2371_s22 }
  0x17   : > { %s2994_s1 = sld [smem:[#allocation25_spill]] }
  0x18   : > { %p2365_p6 = pnand %p1822_p5, %p2983_p1 }
  0x1a   : > { %p2381_p8 = pneg %p2365_p6 }
  0x1d   : > { %s1957_s29 = scalar_lea.hbm %s2994_s1, 128 }
  0x1e   : > { %p1958_p7 = scmp.ne.s32.totalorder %s2994_s1, %s1957_s29  ;;  %p1964_p11 = scmp.lt.u32.totalorder %s1957_s29, %s2994_s1 }
  0x20   : > { %p1960_p9 = pnand %p2381_p8, %p1958_p7 }
  0x22   : > { %p1961_p10 = pneg %p1960_p9 }
  0x24   : > { %p1966_p12 = pnand %p1964_p11, %p1961_p10 }
  0x26   : > { %1969 = shalt.err (!%p1966_p12)
}
  0x27   : > { %s1970_s13 = scalar_lea.vmem %s2353_s30, 128  ;;  %p1978_p5 = scmp.lt.s32.totalorder %s2353_s30, %s2353_s30 }
  0x28   : > { %p1971_p13 = scmp.ne.s32.totalorder %s2353_s30, %s1970_s13  ;;  %p1979_p3 = scmp.lt.s32.totalorder %s1970_s13, %s1970_s13 }
  0x2a   : > { %p1973_p0 = pnand %p1971_p13, %p2381_p8  ;;  %p1980_p7 = por %p1979_p3, %p1978_p5 }
  0x2c   : > { %p1974_p2 = pneg %p1973_p0 }
  0x2e   : > { %p1981_p9 = pnand %p1980_p7, %p1974_p2 }
  0x30   : > { %1984 = shalt.err (!%p1981_p9)
}
  0x31   : > { %1825 = dma.hbm_to_vmem [thread:$0]  (!%p2365_p6), %s2994_s1, 128, %s2353_s30, [#allocation9]  }
  0x32   : > { %s1985_s16 = scalar_lea.hbm %s2970_s3, 128 }
  0x33   : > { %p1986_p10 = scmp.ne.s32.totalorder %s2970_s3, %s1985_s16  ;;  %p1992_p12 = scmp.lt.u32.totalorder %s1985_s16, %s2970_s3 }
  0x35   : > { %p1988_p3 = pnand %p1986_p10, %p2381_p8 }
  0x37   : > { %p1989_p11 = pneg %p1988_p3 }
  0x39   : > { %p1994_p13 = pnand %p1992_p12, %p1989_p11 }
  0x3b   : > { %1997 = shalt.err (!%p1994_p13)
}
  0x3c   : > { %s1998_s30 = scalar_lea.vmem %s2361_s17, 128  ;;  %p2006_p7 = scmp.lt.s32.totalorder %s2361_s17, %s2361_s17 }
  0x3d   : > { %p1999_p0 = scmp.ne.s32.totalorder %s2361_s17, %s1998_s30  ;;  %p2007_p9 = scmp.lt.s32.totalorder %s1998_s30, %s1998_s30 }
  0x3f   : > { %p2001_p2 = pnand %p1999_p0, %p2381_p8  ;;  %p2008_p10 = por %p2007_p9, %p2006_p7 }
  0x41   : > { %p2002_p5 = pneg %p2001_p2 }
  0x43   : > { %p2009_p3 = pnand %p2008_p10, %p2002_p5 }
  0x45   : > { %2012 = shalt.err (!%p2009_p3)
}
  0x46   : > { %1831 = dma.hbm_to_vmem [thread:$0]  (!%p2365_p6), %s2970_s3, 128, %s2361_s17, [#allocation12]  }
  0x47   : > { %s2013_s24 = scalar_lea.hbm %s2969_s2, 128 }
  0x48   : > { %p2014_p11 = scmp.ne.s32.totalorder %s2969_s2, %s2013_s24  ;;  %p2020_p0 = scmp.lt.u32.totalorder %s2013_s24, %s2969_s2 }
  0x4a   : > { %p2016_p12 = pnand %p2014_p11, %p2381_p8 }
  0x4c   : > { %p2017_p13 = pneg %p2016_p12 }
  0x4e   : > { %p2022_p2 = pnand %p2020_p0, %p2017_p13 }
  0x50   : > { %2025 = shalt.err (!%p2022_p2)
}
  0x51   : > { %s2026_s17 = scalar_lea.vmem %s2369_s19, 128  ;;  %p2034_p10 = scmp.lt.s32.totalorder %s2369_s19, %s2369_s19 }
  0x52   : > { %p2027_p5 = scmp.ne.s32.totalorder %s2369_s19, %s2026_s17  ;;  %p2035_p3 = scmp.lt.s32.totalorder %s2026_s17, %s2026_s17 }
  0x54   : > { %p2029_p7 = pnand %p2027_p5, %p2381_p8  ;;  %p2036_p11 = por %p2035_p3, %p2034_p10 }
  0x56   : > { %p2030_p9 = pneg %p2029_p7 }
  0x58   : > { %p2037_p12 = pnand %p2036_p11, %p2030_p9 }
  0x5a   : > { %2040 = shalt.err (!%p2037_p12)
}
  0x5b   : > { %1828 = dma.hbm_to_vmem [thread:$0]  (!%p2365_p6), %s2969_s2, 128, %s2369_s19, [#allocation9]  }
  0x5c   : > { %s2041_s23 = scalar_lea.hbm %s2971_s4, 1024 }
  0x5d   : > { %p2042_p13 = scmp.ne.s32.totalorder %s2971_s4, %s2041_s23  ;;  %p2048_p5 = scmp.lt.u32.totalorder %s2041_s23, %s2971_s4 }
  0x5f   : > { %p2044_p0 = pnand %p2042_p13, %p2381_p8 }
  0x61   : > { %p2045_p2 = pneg %p2044_p0 }
  0x63   : > { %p2050_p7 = pnand %p2048_p5, %p2045_p2 }
  0x65   : > { %2053 = shalt.err (!%p2050_p7)
}
  0x66   : > { %s2054_s13 = scalar_lea.vmem %s389_s22, 1024  ;;  %p2062_p11 = scmp.lt.s32.totalorder %s389_s22, %s389_s22 }
  0x67   : > { %p2055_p9 = scmp.ne.s32.totalorder %s389_s22, %s2054_s13  ;;  %p2063_p12 = scmp.lt.s32.totalorder %s2054_s13, %s2054_s13 }
  0x69   : > { %p2057_p10 = pnand %p2055_p9, %p2381_p8  ;;  %p2064_p1 = por %p2063_p12, %p2062_p11 }
  0x6b   : > { %p2058_p3 = pneg %p2057_p10 }
  0x6d   : > { %p2065_p4 = pnand %p2064_p1, %p2058_p3 }
  0x6f   : > { %2068 = shalt.err (!%p2065_p4)
}
  0x70   : > { %s2241_s19 = smov 128   ;;  %s2242_s17 = smov 8  }
  0x71   : > { %1834 = dma.hbm_to_vmem [thread:$0]  (!%p2365_p6), %s2971_s4, 1024, %s389_s22, [#allocation12], %s2241_s19, %s2241_s19, %s2242_s17  }
  0x72   : > { %s2243_s11 = smov [#allocation14]   ;;  %s2069_s29 = scalar_lea.hbm %s2974_s7, 512 }
  0x73   : > { %s407_s12 = sshll.u32 %s2243_s11, 4  ;;  %p2070_p1 = scmp.ne.s32.totalorder %s2974_s7, %s2069_s29  ;;  %s408_s12 = int_to_ptr.vmem [resolvable:$true] %s407_s12 }
  0x74   : > { %p2076_p0 = scmp.lt.u32.totalorder %s2069_s29, %s2974_s7 }
  0x75   : > { %p2072_p4 = pnand %p2070_p1, %p2381_p8 }
  0x77   : > { %p2073_p13 = pneg %p2072_p4 }
  0x79   : > { %p2078_p2 = pnand %p2076_p0, %p2073_p13 }
  0x7b   : > { %2081 = shalt.err (!%p2078_p2)
}
  0x7c   : > { %s2082_s22 = scalar_lea.vmem %s408_s12, 512  ;;  %p2090_p10 = scmp.lt.s32.totalorder %s408_s12, %s408_s12 }
  0x7d   : > { %p2083_p5 = scmp.ne.s32.totalorder %s408_s12, %s2082_s22  ;;  %p2091_p3 = scmp.lt.s32.totalorder %s2082_s22, %s2082_s22 }
  0x7f   : > { %p2085_p7 = pnand %p2083_p5, %p2381_p8  ;;  %p2092_p11 = por %p2091_p3, %p2090_p10 }
  0x81   : > { %p2086_p9 = pneg %p2085_p7 }
  0x83   : > { %p2093_p12 = pnand %p2092_p11, %p2086_p9 }
  0x85   : > { %2096 = shalt.err (!%p2093_p12)
}
  0x86   : > { %1837 = dma.hbm_to_vmem [thread:$0]  (!%p2365_p6), %s2974_s7, 512, %s408_s12, [#allocation15], %s2241_s19, %s2241_s19, %s2242_s17  }
  0x87   : > { %s1618_s1 = sadd.s32 4294967294, %s2235_s28   ;;  %s2487_s20 = sadd.s32 1, %s2235_s28  }
  0x88   : > { %s41_s18 = sadd.s32 1, %s2231_s27  ;;  %s38_s11 = ssub.s32 %s2235_s28, %s2487_s20 }
  0x89   : > { %p48_p8 = scmp.ne.s32.totalorder %s2231_s27, %s2227_s26  ;;  %p39_p1 = scmp.eq.s32.totalorder %s38_s11, 0 }
  0x8a   : > { %p49_p4 = scmp.eq.s32.totalorder %s2235_s28, 0  ;;  %p54_p13 = scmp.ne.s32.totalorder %s2227_s26, %s2223_s25 }
  0x8b   : > { %p2985_p0 = scmp.eq.s32.totalorder %s2347_s14, 3  ;;  %p2996_p5 = scmp.eq.s32.totalorder %s2347_s14, 0 }
  0x8c   : > { %s2499_s23 = scalar_select %p39_p1, %s2231_s27, %s41_s18  }
  0x8d   : > { %p50_p2 = por %p49_p4, %p48_p8  ;;  %p2503_p7 = por %p2996_p5, %p54_p13 }
  0x8e   : > { %p2509_p6 = por %p2985_p0, %p48_p8  ;;  %p315_p9 = scmp.eq.s32.totalorder %s1618_s1, 3 }
  0x8f   : > { %p1851_p10 = scmp.lt.s32.totalorder %s2235_s28, 4  ;;  %s433_s17 = sand.u32 1, %s2231_s27  }
  0x90   : > { %s2998_s19 = scalar_select %p2509_p6, 1, 0 }
  0x91   : > { %p2515_p3 = por %p315_p9, %p54_p13  ;;  %s1626_s29 = sshll.u32 %s433_s17, 3 }
  0x92   : > { %s1627_s16 = sshll.u32 %s2235_s28, 7  ;;  %s437_s30 = scalar_lea.vmem [#allocation5], %s1626_s29 }
  0x93   : > { %s2999_s12 = scalar_select %p2515_p3, 1, 0 }
  0x94   : > { %s2523_s22 = scalar_lea.hbm %s2967_s0, %s1627_s16  ;;  %s444_s9 = sshll.u32 %s437_s30, 4  ;;  %s2529_s9 = int_to_ptr.vmem [resolvable:$true] %s444_s9 }
  0x95   : > { %p2525_p11 = pnand %p1851_p10, %p50_p2  ;;  %s434_s18 = scalar_lea.sflag [#allocation6], %s433_s17 }
  0x96   : > { %s2097_s11 = scalar_lea.hbm %s2523_s22, 128  ;;  %s2102_s21 = scalar_lea.hbm %s2967_s0, 512 }
  0x97   : > { %p2098_p12 = scmp.ne.s32.totalorder %s2523_s22, %s2097_s11  ;;  %p2099_p8 = pneg %p2525_p11 }
  0x98   : > { %p2103_p13 = scmp.lt.u32.totalorder %s2523_s22, %s2967_s0  ;;  %p2104_p2 = scmp.lt.u32.totalorder %s2102_s21, %s2097_s11 }
  0x99   : > { %p2100_p1 = pnand %p2099_p8, %p2098_p12  ;;  %p2106_p9 = scmp.lt.u32.totalorder %s2097_s11, %s2523_s22 }
  0x9a   : > { %p2105_p5 = por %p2104_p2, %p2103_p13 }
  0x9b   : > { %p2101_p4 = pneg %p2100_p1 }
  0x9c   : > { %p2107_p10 = por %p2106_p9, %p2105_p5 }
  0x9e   : > { %p2108_p0 = pnand %p2107_p10, %p2101_p4 }
  0xa0   : > { %2111 = shalt.err (!%p2108_p0)
}
  0xa1   : > { %s2112_s17 = scalar_lea.vmem %s2529_s9, 128  ;;  %s2244_s16 = smov [#allocation5]  }
  0xa2   : > { %p2113_p12 = scmp.ne.s32.totalorder %s2529_s9, %s2112_s17  ;;  %s2117_s29 = sshll.u32 %s2244_s16, 4  ;;  %s2118_s29 = int_to_ptr.vmem [resolvable:$false] %s2117_s29 }
  0xa3   : > { %s2119_s13 = scalar_lea.vmem %s2118_s29, 256  ;;  %p2120_p6 = scmp.lt.s32.totalorder %s2529_s9, %s2118_s29 }
  0xa4   : > { %p2115_p1 = pnand %p2113_p12, %p2099_p8  ;;  %p2121_p13 = scmp.lt.s32.totalorder %s2119_s13, %s2112_s17 }
  0xa6   : > { %p2116_p3 = pneg %p2115_p1  ;;  %p2122_p2 = por %p2121_p13, %p2120_p6 }
  0xa8   : > { %p2123_p5 = pnand %p2122_p2, %p2116_p3 }
  0xaa   : > { %2126 = shalt.err (!%p2123_p5)
}
  0xab   : > { %1841 = dma.hbm_to_vmem [thread:$0]  (!%p2525_p11), %s2523_s22, 128, %s2529_s9, %s434_s18  }
  0xac   : > { %p3001_p0 = scmp.ne.s32.totalorder %s2992_s15, 0 }
  0xad   : > { %s2559_s11 = sand.u32 (!%p3001_p0), 1, %s2227_s26  }
  0xae   : > { %453 = sbr.rel (%p3001_p0) target bundleno = 2866 (0xb32), region = 68  ;;  %s1629_s21 = sshll.u32 (!%p3001_p0), %s2559_s11, 3 }
  0xaf   : > { %s456_s30 = scalar_lea.sflag (!%p3001_p0), [#allocation6], %s2559_s11  ;;  %s2563_s17 = scalar_lea.vmem (!%p3001_p0), [#allocation5], %s1629_s21 }
  0xb5   : > { %2198 = dma.done.wait (%p2503_p7), %s456_s30, 128  }
  0xb6   : > { %2200 = vsyncadd (%p2503_p7), %s456_s30, 4294967168  ;;  %p3002_p6 = scmp.eq.s32.totalorder %s2347_s14, 0 }
  0xb8   : > { %2202 = dma.done.wait (%p3002_p6), [#allocation9], 256   ;;  %p3003_p3 = pmov %p3002_p6 }
  0xba   : > { %2204 = vsyncadd (%p3003_p3), [#allocation9], 4294967040  ;;  %p3004_p11 = pmov %p3003_p3 }
  0xbb   : > { %p3005_p8 = pmov %p3003_p3 }
  0xbc   : > { %2206 = dma.done.wait (%p3004_p11), [#allocation12], 1152  }
  0xbd   : > { %2208 = vsyncadd (%p3005_p8), [#allocation12], 4294966144  ;;  %p3006_p4 = pmov %p3003_p3 }
  0xbe   : > { %p3007_p9 = pmov %p3003_p3 }
  0xbf   : > { %2210 = dma.done.wait (%p3006_p4), [#allocation15], 512  }
  0xc0   : > { %2212 = vsyncadd (%p3007_p9), [#allocation15], 4294966784  ;;  %s2581_s15 = scalar_lea.vmem [#allocation16], %s1629_s21  ;;  %p3008_p7 = scmp.ne.s32.totalorder %s2347_s14, 0 }
  0xc1   : > { %v526_v0 = vld [vmem:[#allocation8] sm:$0xff] (!%p3008_p7)  ;;  %vm527_vm0 = vcmask (!%p3008_p7), 261120   ;;  %v529_v1 = vld [vmem:[#allocation10] sm:$0xff] (!%p3008_p7)  ;;  %v531_v2 = vld [vmem:[#allocation11] sm:$0xff] (!%p3008_p7) }
  0xc2   : > { %525 = sbr.rel (%p3008_p7) target bundleno = 201 (0xc9), region = 96  ;;  %528 = vst.msk [vmem:[#allocation2] sm:$0xff] (!%p3008_p7), %vm527_vm0, %v526_v0  ;;  %530 = vst.msk [vmem:[#allocation3] sm:$0xff] (!%p3008_p7), %vm527_vm0, %v529_v1 }
  0xc3   : > { %532 = vst.msk [vmem:[#allocation4] sm:$0xff] (!%p3008_p7), %vm527_vm0, %v531_v2 }
  0xc9 PF: > { %v549_v4 = vld [vmem:[%s2972_s5] sm:$0xff]  ;;  %s2245_s9 = smov 32   ;;  %v2246_v5 = vmov 0.0|0.0   ;;  %v550_v6 = vld [vmem:[%s2972_s5 + $0x8] sm:$0xff]  ;;  %v551_v7 = vld [vmem:[%s2972_s5 + $0x10] sm:$0xff]  ;;  %vm2247_vm1 = vmmov 0   ;;  %v762_v58 = vlaneseq }
  0xca   : > { %v536_v3 = vld [vmem:[#allocation4] sm:$0xff]  ;;  %1752 = vmatprep.subr.bf16.mxu0 %v2246_v5  ;;  %v552_v8 = vld [vmem:[%s2972_s5 + $0x18] sm:$0xff]  ;;  %v534_v9 = vld [vmem:[#allocation2] sm:$0xff]  ;;  %v1753_v10 = vpack.c.bf16 %v550_v6, %v549_v4  ;;  %1770 = vmatprep.subr.bf16.mxu1 %v2246_v5  ;;  %v2248_v11 = vmov 0.0   ;;  %s2249_s30 = smov 64   ;;  %vm545_vm2 = vcmask 261120  }
  0xcb   : > { %538 = vrot.lane.b32.xlu0 %v536_v3, %s2245_s9  ;;  %1708 = vmatprep.mubr.msk.f32.mxu0 %vm2247_vm1, %v2248_v11  ;;  %v1756_v12 = vpack.c.bf16 %v552_v8, %v551_v7  ;;  %v553_v13 = vld [vmem:[%s2972_s5 + $0x20] sm:$0xff]  ;;  %v554_v14 = vld [vmem:[%s2972_s5 + $0x28] sm:$0xff]  ;;  %v555_v16 = vld [vmem:[%s2972_s5 + $0x30] sm:$0xff]  ;;  %vm547_vm3 = vcmask 523264   ;;  %vm568_vm4 = vcmask 785408   ;;  %v2665_v60 = vshrl.u32 %v762_v58, 7 }
  0xcc   : > { %1719 = vmatprep.mubr.msk.f32.mxu1 %vm2247_vm1, %v2248_v11  ;;  %1754 = vmatpush3.bf16.msra.mxu0 %v1753_v10  ;;  %v1759_v15 = vpack.c.bf16 %v554_v14, %v553_v13  ;;  %v556_v17 = vld [vmem:[%s2972_s5 + $0x38] sm:$0xff]  ;;  %v557_v19 = vld [vmem:[%s2972_s5 + $0x40] sm:$0xff]  ;;  %v558_v20 = vld [vmem:[%s2972_s5 + $0x48] sm:$0xff]  ;;  %v2250_v56 = vmov 1966171168   ;;  %vm921_vm5 = vcmask 1041409  }
  0xcd   : > { %1755 = vmatprep.subr.bf16.mxu0 %v2246_v5  ;;  %v1762_v18 = vpack.c.bf16 %v556_v17, %v555_v16  ;;  %v1765_v21 = vpack.c.bf16 %v558_v20, %v557_v19  ;;  %v559_v22 = vld [vmem:[%s2972_s5 + $0x50] sm:$0xff]  ;;  %v560_v23 = vld [vmem:[%s2972_s5 + $0x58] sm:$0xff]  ;;  %v1637_v30 = vld [vmem:[%s2973_s6] ss:$0 sm:$0xff]  ;;  %v760_v57 = vunpack.c.l.s4 %v2250_v56  ;;  %v2669_v2 = vsub.s32 0, %v2665_v60  ;;  %s3009_s18 = sld [smem:[#allocation26_spill]] }
  0xce   : > { %v1768_v24 = vpack.c.bf16 %v560_v23, %v559_v22  ;;  %v533_v26 = vld [vmem:[%s2563_s17] sm:$0xff]  ;;  %v535_v35 = vld [vmem:[#allocation3] sm:$0xff]  ;;  %v680_v48 = vld [vmem:[#allocation14 + $0x10] sm:$0xff]  ;;  %vm923_vm6 = vcmask 1042434   ;;  %vm925_vm7 = vcmask 1043459   ;;  %vm927_vm8 = vcmask 1044484  }
  0xcf   : > { %542 = vrot.lane.b32.xlu0 %v534_v9, %s2249_s30  ;;  %v678_v46 = vld [vmem:[#allocation14] sm:$0xff]  ;;  %v679_v47 = vld [vmem:[#allocation14 + $0x8] sm:$0xff]  ;;  %v681_v50 = vld [vmem:[#allocation14 + $0x18] sm:$0xff]  ;;  %v761_v59 = vunpack.c.0.s8 %v760_v57  ;;  %vm929_vm9 = vcmask 1045509   ;;  %vm931_vm10 = vcmask 1046534   ;;  %vm933_vm11 = vcmask 1047559  }
  0xd0   : > { %1757 = vmatpush3.bf16.msra.mxu0 %v1756_v12  ;;  %v1771_v49 = vpack.c.bf16 %v679_v47, %v678_v46  ;;  %v1774_v51 = vpack.c.bf16 %v681_v50, %v680_v48  ;;  %v2671_v10 = vld [vmem:[#allocation13] sm:$0xff]  ;;  %v2674_v13 = vld [vmem:[#allocation13 + $0x8] sm:$0xff]  ;;  %v2679_v19 = vld [vmem:[#allocation13 + $0x18] sm:$0xff]  ;;  %v888_v48 = vand.u32 127, %v762_v58  ;;  %vm936_vm12 = vcmask 64512   ;;  %s3010_s13 = sld [smem:[#allocation27_spill]] }
  0xd1   : > { %1758 = vmatprep.subr.bf16.mxu0 %v2246_v5  ;;  %v764_v61 = vsub.s32 %v761_v59, %v2665_v60  ;;  %v2681_v20 = vld [vmem:[#allocation13 + $0x10] sm:$0xff]  ;;  %s2252_s21 = smov 96   ;;  %p1645_p10 = scmp.ne.s32.totalorder %s2347_s14, 3 }
  0xd2   : > { %1772 = vmatpush3.bf16.msra.mxu1 %v1771_v49  ;;  %v2712_v50 = vsub.s32 %v888_v48, %v2665_v60  ;;  %s2253_s24 = smov (!%p1645_p10), 64  }
  0xd3   : > { %1773 = vmatprep.subr.bf16.mxu1 %v2246_v5 }
  0xd4   : > { %1760 = vmatpush3.bf16.msra.mxu0 %v1759_v15 }
  0xd5   : > { %1761 = vmatprep.subr.bf16.mxu0 %v2246_v5 }
  0xd6   : > { %1775 = vmatpush3.bf16.msra.mxu1 %v1774_v51 }
  0xd7   : > { %1776 = vmatprep.subr.bf16.mxu1 %v2246_v5 }
  0xd8   : > { %1763 = vmatpush3.bf16.msra.mxu0 %v1762_v18 }
  0xd9   : > { %1764 = vmatprep.subr.bf16.mxu0 %v2246_v5 }
  0xdc   : > { %1766 = vmatpush3.bf16.msra.mxu0 %v1765_v21 }
  0xdd   : > { %1767 = vmatprep.subr.bf16.mxu0 %v2246_v5 }
  0xe0   : > { %1769 = vmatpush3.bf16.msra.mxu0 %v1768_v24 }
  0xe1   : > { %1788 = vmatprep.subr.bf16.mxu0 %v2246_v5 }
 0x13d   : > { %v539_v25 = vpop.permute.xlu0 %538 }
 0x13e   : > { %v546_v27 = vsel %vm545_vm2, %v533_v26, %v539_v25 }
 0x141   : > { %v543_v28 = vpop.permute.xlu0 %542 }
 0x142   : > { %v548_v29 = vsel %vm547_vm3, %v546_v27, %v543_v28 }
 0x143   : > { %1709 = vmatmul.mubr.msk.f32.vlgmr.msra.gmra.mrb[0].mxu0 %vm568_vm4, %v548_v29 }
 0x144   : > { %1749 = vmatprep.mubr.msk.f32.mxu0 %vm2247_vm1, %v2248_v11 }
 0x216   : > { %v638_v31 = vpop.f32.mrb[0].mxu0 }
 0x217   : > { %v639_v32 = vadd.f32 %v1637_v30, %v638_v31  ;;  %v1710_v33 = vpop.f32.mrb[1].mxu0  ;;  %v2691_v30 = vld [vmem:[#allocation13 + $0x28] sm:$0xff] }
 0x219   : > { %1911 = vtanh.f32 %v639_v32  ;;  %v1639_v36 = vmul.f32 -1.442695, %v639_v32  ;;  %v2693_v32 = vld [vmem:[#allocation13 + $0x20] sm:$0xff] }
 0x21b   : > { %1913 = vpow2.f32 %v1639_v36 }
 0x223   : > { %v1912_v34 = vpop.eup %1911 }
 0x224   : > { %655 = vrot.lane.b32.xlu1 %v1912_v34, %s2249_s30 }
 0x225   : > { %v1914_v37 = vpop.eup %1913 }
 0x226   : > { %v645_v38 = vadd.f32 1.0, %v1914_v37 }
 0x228   : > { %650 = vrot.lane.b32.xlu1 %v535_v35, %s2245_s9  ;;  %1915 = vrcp.f32 %v645_v38  ;;  %v2700_v38 = vld [vmem:[#allocation13 + $0x38] sm:$0xff] }
 0x232   : > { %v1916_v39 = vpop.eup %1915 }
 0x296   : > { %v656_v40 = vpop.permute.xlu1 %655 }
 0x297   : > { %v658_v41 = vmul.f32 %v1916_v39, %v656_v40  ;;  %v2703_v40 = vld [vmem:[#allocation13 + $0x30] sm:$0xff] }
 0x299   : > { %660 = vrot.lane.b32.xlu0 %v658_v41, %s2245_s9 }
 0x29a   : > { %v651_v42 = vpop.permute.xlu1 %650 }
 0x29b   : > { %v653_v43 = vmul.f32 %v1916_v39, %v651_v42 }
 0x30b   : > { %v661_v44 = vpop.permute.xlu0 %660 }
 0x30c   : > { %v2647_v45 = vadd.f32 %v661_v44, %v653_v43 }
 0x30e   : > { %1917 = vtanh.f32 %v2647_v45 }
 0x318   : > { %v1918_v52 = vpop.eup %1917 }
 0x319   : > { %666 = vrot.lane.b32.xlu1 %v1918_v52, %s2249_s30 }
 0x38b   : > { %v667_v53 = vpop.permute.xlu1 %666 }
 0x38c   : > { %v2653_v54 = vmul.f32 %v1916_v39, %v667_v53 }
 0x38e   : > { %683 = vrot.lane.b32.xlu0 %v2653_v54, %s2245_s9 }
 0x400   : > { %v2657_v55 = vpop.permute.xlu0 %683 }
 0x401   : > { %1446 = vst.msk [vmem:[#allocation2] sm:$0xff] %vm545_vm2, %v2657_v55  ;;  %1720 = vmatmul.mubr.msk.f32.vlgmr.msra.gmra.mrb[0].mxu1 %vm545_vm2, %v2657_v55 }
 0x402   : > { %1738 = vmatprep.mubr.msk.f32.mxu1 %vm2247_vm1, %v2248_v11 }
 0x4d4   : > { %v753_v62 = vpop.f32.mrb[0].mxu1 }
 0x4d5   : > { %v758_v63 = vcombine.high %v753_v62, %v753_v62  ;;  %v765_v0 = vrot.slane %v753_v62, %v764_v61  ;;  %v1721_v1 = vpop.f32.mrb[1].mxu1 }
 0x4d7   : > { %v772_v3 = vrot.slane %v758_v63, %v764_v61  ;;  %v773_v4 = vcombine.high %v765_v0, %v765_v0  ;;  %v781_v6 = vrot.slane %v765_v0, %v764_v61 }
 0x4d9   : > { %v774_v7 = vcombine.high %v772_v3, %v772_v3  ;;  %v795_v8 = vrot.slane %v773_v4, %v764_v61  ;;  %v803_v9 = vcombine.high %v781_v6, %v781_v6  ;;  %v788_v11 = vrot.slane %v772_v3, %v764_v61 }
 0x4da   : > { %v810_v12 = vrot.slane %v781_v6, %v2669_v2 }
 0x4db   : > { %v814_v14 = vrot.slane %v795_v8, %v2669_v2  ;;  %v805_v15 = vcombine.high %v795_v8, %v795_v8  ;;  %v818_v16 = vrot.slane %v803_v9, %v2669_v2  ;;  %v802_v17 = vrot.slane %v774_v7, %v764_v61 }
 0x4dc   : > { %v847_v18 = vmul.f32 %v810_v12, %v2671_v10  ;;  %v826_v25 = vrot.slane %v788_v11, %v2669_v2  ;;  %v804_v31 = vcombine.high %v788_v11, %v788_v11 }
 0x4dd   : > { %v848_v21 = vmul.f32 %v814_v14, %v2674_v13  ;;  %v822_v22 = vrot.slane %v805_v15, %v2669_v2  ;;  %v830_v24 = vrot.slane %v802_v17, %v2669_v2  ;;  %v806_v26 = vcombine.high %v802_v17, %v802_v17 }
 0x4de   : > { %v855_v23 = vsel %vm545_vm2, %v847_v18, 0.0  ;;  %v849_v29 = vmul.f32 %v818_v16, %v2681_v20  ;;  %v851_v37 = vmul.f32 %v826_v25, %v2693_v32  ;;  %v834_v39 = vrot.slane %v804_v31, %v2669_v2 }
 0x4df   : > { %856 = vadd.xlane.f32.xlu1 %v855_v23  ;;  %v858_v27 = vsel %vm545_vm2, %v848_v21, 0.0  ;;  %v850_v28 = vmul.f32 %v822_v22, %v2679_v19  ;;  %v852_v34 = vmul.f32 %v830_v24, %v2691_v30  ;;  %v838_v35 = vrot.slane %v806_v26, %v2669_v2 }
 0x4e0   : > { %859 = vadd.xlane.f32.xlu0 %v858_v27  ;;  %v861_v36 = vsel %vm545_vm2, %v849_v29, 0.0  ;;  %v867_v43 = vsel %vm545_vm2, %v851_v37, 0.0  ;;  %v853_v44 = vmul.f32 %v834_v39, %v2703_v40  ;;  %v2251_v17 = vmov 0  }
 0x4e1   : > { %v864_v33 = vsel %vm545_vm2, %v850_v28, 0.0  ;;  %v870_v41 = vsel %vm545_vm2, %v852_v34, 0.0  ;;  %v854_v42 = vmul.f32 %v838_v35, %v2700_v38  ;;  %1910 = vset.pattern.permute.xlu0 %v2251_v17  ;;  %1909 = vset.pattern.permute.xlu1 %v2251_v17  ;;  %v947_v18 = vsub.s32 1, %v2665_v60 }
 0x4e2   : > { %v873_v47 = vsel %vm545_vm2, %v853_v44, 0.0  ;;  %v951_v21 = vsub.s32 2, %v2665_v60  ;;  %v955_v22 = vsub.s32 3, %v2665_v60  ;;  %v959_v27 = vsub.s32 4, %v2665_v60 }
 0x4e3   : > { %865 = vadd.xlane.f32.xlu1 %v864_v33  ;;  %v876_v46 = vsel %vm545_vm2, %v854_v42, 0.0  ;;  %v967_v42 = vsub.s32 6, %v2665_v60 }
 0x4e4   : > { %862 = vadd.xlane.f32.xlu0 %v861_v36  ;;  %v963_v36 = vsub.s32 5, %v2665_v60 }
 0x4e7   : > { %871 = vadd.xlane.f32.xlu1 %v870_v41 }
 0x4e8   : > { %868 = vadd.xlane.f32.xlu0 %v867_v43 }
 0x4eb   : > { %877 = vadd.xlane.f32.xlu1 %v876_v46 }
 0x4ec   : > { %874 = vadd.xlane.f32.xlu0 %v873_v47  ;;  %v971_v47 = vsub.s32 7, %v2665_v60 }
 0x56c   : > { %v857_v49 = vpop.xlane.xlu1 %856 }
 0x56d   : > { %v860_v51 = vpop.xlane.xlu0 %859  ;;  %v892_v56 = vrot.slane %v857_v49, %v2712_v50 }
 0x56e   : > { %v896_v52 = vrot.slane %v860_v51, %v2712_v50 }
 0x570   : > { %v866_v53 = vpop.xlane.xlu1 %865  ;;  %v922_v61 = vsel %vm921_vm5, %v896_v52, %v892_v56 }
 0x571   : > { %v863_v57 = vpop.xlane.xlu0 %862  ;;  %v904_v63 = vrot.slane %v866_v53, %v2712_v50 }
 0x572   : > { %v900_v59 = vrot.slane %v863_v57, %v2712_v50 }
 0x574   : > { %v924_v62 = vsel %vm923_vm6, %v900_v59, %v922_v61  ;;  %v872_v58 = vpop.xlane.xlu1 %871 }
 0x575   : > { %v869_v0 = vpop.xlane.xlu0 %868  ;;  %v926_v3 = vsel %vm925_vm7, %v904_v63, %v924_v62  ;;  %v912_v7 = vrot.slane %v872_v58, %v2712_v50 }
 0x576   : > { %v908_v1 = vrot.slane %v869_v0, %v2712_v50 }
 0x578   : > { %v928_v4 = vsel %vm927_vm8, %v908_v1, %v926_v3  ;;  %v2723_v6 = vpop.xlane.xlu1 %877 }
 0x579   : > { %v875_v8 = vpop.xlane.xlu0 %874  ;;  %v920_v11 = vrot.slane %v2723_v6, %v2712_v50  ;;  %v930_v12 = vsel %vm929_vm9, %v912_v7, %v928_v4 }
 0x57a   : > { %v916_v9 = vrot.slane %v875_v8, %v2712_v50 }
 0x57c   : > { %v932_v14 = vsel %vm931_vm10, %v916_v9, %v930_v12 }
 0x57d   : > { %v934_v15 = vsel %vm933_vm11, %v920_v11, %v932_v14 }
 0x57e   : > { %v937_v16 = vsel %vm936_vm12, %v934_v15, -inf }
 0x57f   : > { %938 = vmax.xlane.f32.xlu0 %v937_v16 }
 0x60c   : > { %v939_v23 = vpop.xlane.xlu0 %938 }
 0x60d   : > { %v944_v24 = vrot.slane %v939_v23, %v2669_v2  ;;  %v948_v25 = vrot.slane %v939_v23, %v947_v18  ;;  %v952_v26 = vrot.slane %v939_v23, %v951_v21  ;;  %v956_v28 = vrot.slane %v939_v23, %v955_v22 }
 0x60e   : > { %v960_v37 = vrot.slane %v939_v23, %v959_v27  ;;  %v964_v43 = vrot.slane %v939_v23, %v963_v36  ;;  %v968_v48 = vrot.slane %v939_v23, %v967_v42  ;;  %v972_v56 = vrot.slane %v939_v23, %v971_v47 }
 0x60f   : > { %v981_v29 = vsub.f32 %v857_v49, %v944_v24  ;;  %v982_v31 = vsub.f32 %v860_v51, %v948_v25  ;;  %v983_v33 = vsub.f32 %v863_v57, %v952_v26  ;;  %v984_v39 = vsub.f32 %v866_v53, %v956_v28 }
 0x610   : > { %v985_v44 = vsub.f32 %v869_v0, %v960_v37  ;;  %v986_v49 = vsub.f32 %v872_v58, %v964_v43  ;;  %v987_v57 = vsub.f32 %v875_v8, %v968_v48  ;;  %v988_v62 = vsub.f32 %v2723_v6, %v972_v56 }
 0x611   : > { %v989_v34 = vmul.f32 1.442695, %v981_v29  ;;  %v991_v35 = vmul.f32 1.442695, %v982_v31  ;;  %v993_v41 = vmul.f32 1.442695, %v983_v33 }
 0x612   : > { %v995_v46 = vmul.f32 1.442695, %v984_v39  ;;  %v997_v51 = vmul.f32 1.442695, %v985_v44  ;;  %v999_v59 = vmul.f32 1.442695, %v986_v49 }
 0x613   : > { %1919 = vpow2.f32 %v989_v34  ;;  %v1001_v58 = vmul.f32 1.442695, %v987_v57  ;;  %v1003_v0 = vmul.f32 1.442695, %v988_v62 }
 0x614   : > { %1921 = vpow2.f32 %v991_v35 }
 0x615   : > { %1923 = vpow2.f32 %v993_v41 }
 0x616   : > { %1925 = vpow2.f32 %v995_v46 }
 0x617   : > { %1927 = vpow2.f32 %v997_v51 }
 0x618   : > { %1929 = vpow2.f32 %v999_v59 }
 0x619   : > { %1931 = vpow2.f32 %v1001_v58 }
 0x61a   : > { %1933 = vpow2.f32 %v1003_v0 }
 0x61d   : > { %v2753_v52 = vpop.eup %1919 }
 0x61e   : > { %v2755_v53 = vpop.eup %1921  ;;  %1014 = vperm.xlu1 %1909, %v2753_v52  }
 0x61f   : > { %1017 = vperm.xlu0 %1910, %v2755_v53   ;;  %v2761_v61 = vpop.eup %1923 }
 0x620   : > { %v2765_v63 = vpop.eup %1925 }
 0x621   : > { %v2768_v1 = vpop.eup %1927 }
 0x622   : > { %1020 = vperm.xlu1 %1909, %v2761_v61   ;;  %v2771_v3 = vpop.eup %1929 }
 0x623   : > { %v2774_v4 = vpop.eup %1931 }
 0x624   : > { %v2777_v6 = vpop.eup %1933 }
 0x626   : > { %1023 = vperm.xlu1 %1909, %v2765_v63  }
 0x62a   : > { %1026 = vperm.xlu1 %1909, %v2768_v1  }
 0x62e   : > { %1029 = vperm.xlu1 %1909, %v2771_v3  }
 0x632   : > { %1032 = vperm.xlu1 %1909, %v2774_v4  }
 0x636   : > { %1035 = vperm.xlu1 %1909, %v2777_v6  }
 0x69d   : > { %v1015_v7 = vpop.permute.xlu1 %1014 }
 0x69e   : > { %v1018_v12 = vpop.permute.xlu0 %1017  ;;  %v1040_v16 = vrot.slane %v1015_v7, %v2712_v50 }
 0x69f   : > { %v1044_v15 = vrot.slane %v1018_v12, %v2712_v50 }
 0x6a1   : > { %v1021_v8 = vpop.permute.xlu1 %1020  ;;  %v1069_v26 = vsel %vm921_vm5, %v1044_v15, %v1040_v16  ;;  %v1268_v15 = vld [vmem:[%s2975_s8 + $0x38] sm:$0xff] }
 0x6a2   : > { %v1048_v17 = vrot.slane %v1021_v8, %v2712_v50 }
 0x6a4   : > { %v1070_v29 = vsel %vm923_vm6, %v1048_v17, %v1069_v26 }
 0x6a5   : > { %v1024_v9 = vpop.permute.xlu1 %1023 }
 0x6a6   : > { %v1052_v23 = vrot.slane %v1024_v9, %v2712_v50  ;;  %v1265_v9 = vld [vmem:[%s2975_s8 + $0x20] sm:$0xff] }
 0x6a8   : > { %v1071_v33 = vsel %vm925_vm7, %v1052_v23, %v1070_v29 }
 0x6a9   : > { %v1027_v11 = vpop.permute.xlu1 %1026 }
 0x6aa   : > { %v1056_v24 = vrot.slane %v1027_v11, %v2712_v50  ;;  %v1266_v11 = vld [vmem:[%s2975_s8 + $0x28] sm:$0xff] }
 0x6ab   : > { %v1783_v12 = vpack.c.bf16 %v1266_v11, %v1265_v9 }
 0x6ac   : > { %v1072_v34 = vsel %vm927_vm8, %v1056_v24, %v1071_v33 }
 0x6ad   : > { %v1030_v14 = vpop.permute.xlu1 %1029 }
 0x6ae   : > { %v1060_v28 = vrot.slane %v1030_v14, %v2712_v50  ;;  %v1267_v14 = vld [vmem:[%s2975_s8 + $0x30] sm:$0xff] }
 0x6af   : > { %v1786_v16 = vpack.c.bf16 %v1268_v15, %v1267_v14 }
 0x6b0   : > { %v1073_v37 = vsel %vm929_vm9, %v1060_v28, %v1072_v34 }
 0x6b1   : > { %v1033_v25 = vpop.permute.xlu1 %1032 }
 0x6b2   : > { %v1064_v31 = vrot.slane %v1033_v25, %v2712_v50 }
 0x6b4   : > { %v1074_v41 = vsel %vm931_vm10, %v1064_v31, %v1073_v37 }
 0x6b5   : > { %v1036_v35 = vpop.permute.xlu1 %1035 }
 0x6b6   : > { %v1068_v39 = vrot.slane %v1036_v35, %v2712_v50 }
 0x6b8   : > { %v1075_v43 = vsel %vm933_vm11, %v1068_v39, %v1074_v41 }
 0x6b9   : > { %v1077_v44 = vsel %vm936_vm12, %v1075_v43, 0.0 }
 0x6ba   : > { %1078 = vadd.xlane.f32.xlu1 %v1077_v44 }
 0x6cb   : > { %1257 = vrot.lane.b32.xlu1 %v2653_v54, %s2249_s30 }
 0x747   : > { %v1079_v46 = vpop.xlane.xlu1 %1078 }
 0x748   : > { %v1084_v48 = vrot.slane %v1079_v46, %v2669_v2  ;;  %v1088_v49 = vrot.slane %v1079_v46, %v947_v18  ;;  %v1092_v50 = vrot.slane %v1079_v46, %v951_v21  ;;  %v1096_v51 = vrot.slane %v1079_v46, %v955_v22 }
 0x749   : > { %v1100_v54 = vrot.slane %v1079_v46, %v959_v27  ;;  %v1104_v18 = vrot.slane %v1079_v46, %v963_v36  ;;  %v1108_v22 = vrot.slane %v1079_v46, %v967_v42  ;;  %v1112_v27 = vrot.slane %v1079_v46, %v971_v47  ;;  %v1261_v47 = vld [vmem:[%s2975_s8] sm:$0xff] }
 0x74a   : > { %1935 = vrcp.f32 %v1084_v48 }
 0x74b   : > { %1937 = vrcp.f32 %v1088_v49 }
 0x74c   : > { %1939 = vrcp.f32 %v1092_v50 }
 0x74d   : > { %1941 = vrcp.f32 %v1096_v51 }
 0x74e   : > { %1943 = vrcp.f32 %v1100_v54 }
 0x74f   : > { %1945 = vrcp.f32 %v1104_v18 }
 0x750   : > { %1947 = vrcp.f32 %v1108_v22 }
 0x751   : > { %1949 = vrcp.f32 %v1112_v27 }
 0x754   : > { %v1936_v56 = vpop.eup %1935 }
 0x755   : > { %v1122_v57 = vmul.f32 %v1936_v56, %v2753_v52  ;;  %v1938_v2 = vpop.eup %1937 }
 0x756   : > { %v1124_v59 = vmul.f32 %v1938_v2, %v2755_v53  ;;  %v1940_v21 = vpop.eup %1939 }
 0x757   : > { %1139 = vperm.xlu0 %1910, %v1122_v57   ;;  %v1126_v62 = vmul.f32 %v1940_v21, %v2761_v61  ;;  %v1942_v58 = vpop.eup %1941 }
 0x758   : > { %v1128_v52 = vmul.f32 %v1942_v58, %v2765_v63  ;;  %v1944_v0 = vpop.eup %1943  ;;  %v1262_v63 = vld [vmem:[%s2975_s8 + $0x8] sm:$0xff] }
 0x759   : > { %v1130_v36 = vmul.f32 %v1944_v0, %v2768_v1  ;;  %v1946_v53 = vpop.eup %1945  ;;  %v1777_v1 = vpack.c.bf16 %v1262_v63, %v1261_v47 }
 0x75a   : > { %v1132_v7 = vmul.f32 %v1946_v53, %v2771_v3  ;;  %v1948_v42 = vpop.eup %1947  ;;  %v1263_v3 = vld [vmem:[%s2975_s8 + $0x10] sm:$0xff] }
 0x75b   : > { %1144 = vperm.xlu0 %1910, %v1124_v59   ;;  %v1134_v61 = vmul.f32 %v1948_v42, %v2774_v4  ;;  %v1950_v8 = vpop.eup %1949  ;;  %1778 = vmatpush3.bf16.msra.mxu1 %v1777_v1  ;;  %v1264_v4 = vld [vmem:[%s2975_s8 + $0x18] sm:$0xff] }
 0x75c   : > { %v1136_v60 = vmul.f32 %v1950_v8, %v2777_v6  ;;  %1779 = vmatprep.subr.bf16.mxu1 %v2246_v5  ;;  %v1780_v6 = vpack.c.bf16 %v1264_v4, %v1263_v3 }
 0x75f   : > { %1149 = vperm.xlu0 %1910, %v1126_v62   ;;  %1781 = vmatpush3.bf16.msra.mxu1 %v1780_v6 }
 0x760   : > { %1782 = vmatprep.subr.bf16.mxu1 %v2246_v5 }
 0x763   : > { %1154 = vperm.xlu0 %1910, %v1128_v52   ;;  %1784 = vmatpush3.bf16.msra.mxu1 %v1783_v12 }
 0x764   : > { %1785 = vmatprep.subr.bf16.mxu1 %v2246_v5 }
 0x767   : > { %1159 = vperm.xlu0 %1910, %v1130_v36   ;;  %1787 = vmatpush3.bf16.msra.mxu1 %v1786_v16 }
 0x76b   : > { %1164 = vperm.xlu0 %1910, %v1132_v7  }
 0x76f   : > { %1169 = vperm.xlu0 %1910, %v1134_v61  }
 0x773   : > { %1174 = vperm.xlu0 %1910, %v1136_v60  }
 0x7d6   : > { %v1140_v17 = vpop.permute.xlu0 %1139 }
 0x7d7   : > { %v1177_v26 = vmul.f32 %v1140_v17, %v2671_v10 }
 0x7d9   : > { %v1185_v34 = vsel %vm545_vm2, %v1177_v26, 0.0 }
 0x7da   : > { %v1145_v23 = vpop.permute.xlu0 %1144  ;;  %v1186_v43 = vrot.slane %v1185_v34, 4 }
 0x7db   : > { %v1178_v24 = vmul.f32 %v1145_v23, %v2674_v13 }
 0x7dc   : > { %v1187_v49 = vadd.f32 %v1186_v43, %v1185_v34 }
 0x7dd   : > { %v1192_v29 = vsel %vm545_vm2, %v1178_v24, 0.0 }
 0x7de   : > { %v1150_v25 = vpop.permute.xlu0 %1149  ;;  %v1193_v37 = vrot.slane %v1192_v29, 4  ;;  %v1188_v59 = vrot.slane %v1187_v49, 2 }
 0x7df   : > { %v1179_v28 = vmul.f32 %v1150_v25, %v2681_v20 }
 0x7e0   : > { %v1194_v46 = vadd.f32 %v1193_v37, %v1192_v29  ;;  %v1189_v53 = vadd.f32 %v1188_v59, %v1187_v49  ;;  %v1351_v49 = vld [vmem:[%s2977_s10 + $0x8] sm:$0xff] }
 0x7e1   : > { %v1199_v31 = vsel %vm545_vm2, %v1179_v28, 0.0 }
 0x7e2   : > { %v1155_v33 = vpop.permute.xlu0 %1154  ;;  %v1200_v39 = vrot.slane %v1199_v31, 4 }
 0x7e3   : > { %v1180_v35 = vmul.f32 %v1155_v33, %v2679_v19  ;;  %v1195_v19 = vrot.slane %v1194_v46, 2 }
 0x7e4   : > { %v1201_v20 = vadd.f32 %v1200_v39, %v1199_v31 }
 0x7e5   : > { %v1206_v41 = vsel %vm545_vm2, %v1180_v35, 0.0  ;;  %v1196_v27 = vadd.f32 %v1195_v19, %v1194_v46  ;;  %v1641_v19 = vld [vmem:[%s3009_s18] ss:$0 sm:$0xff] }
 0x7e6   : > { %v1207_v13 = vrot.slane %v1206_v41, 4  ;;  %v1160_v44 = vpop.permute.xlu0 %1159  ;;  %v1202_v2 = vrot.slane %v1201_v20, 2 }
 0x7e7   : > { %v1181_v10 = vmul.f32 %v1160_v44, %v2693_v32  ;;  %v1197_v47 = vrot.slane %v1196_v27, 1 }
 0x7e8   : > { %v1208_v50 = vadd.f32 %v1207_v13, %v1206_v41  ;;  %v1203_v0 = vadd.f32 %v1202_v2, %v1201_v20 }
 0x7e9   : > { %v1213_v48 = vsel %vm545_vm2, %v1181_v10, 0.0  ;;  %v1198_v14 = vadd.f32 %v1197_v47, %v1196_v27  ;;  %v1258_v10 = vpop.permute.xlu1 %1257 }
 0x7ea   : > { %v1214_v51 = vrot.slane %v1213_v48, 4  ;;  %v1165_v56 = vpop.permute.xlu0 %1164  ;;  %v1209_v21 = vrot.slane %v1208_v50, 2  ;;  %v1204_v3 = vrot.slane %v1203_v0, 1 }
 0x7eb   : > { %v1182_v54 = vmul.f32 %v1165_v56, %v2691_v30  ;;  %v1353_v56 = vld [vmem:[%s2977_s10 + $0x18] sm:$0xff] }
 0x7ec   : > { %v1215_v57 = vadd.f32 %v1214_v51, %v1213_v48  ;;  %v1210_v7 = vadd.f32 %v1209_v21, %v1208_v50  ;;  %v1205_v23 = vadd.f32 %v1204_v3, %v1203_v0  ;;  %v1350_v48 = vld [vmem:[%s2977_s10] sm:$0xff]  ;;  %v1352_v51 = vld [vmem:[%s2977_s10 + $0x10] sm:$0xff] }
 0x7ed   : > { %v1220_v18 = vsel %vm545_vm2, %v1182_v54, 0.0  ;;  %v1789_v50 = vpack.c.bf16 %v1351_v49, %v1350_v48  ;;  %v1792_v54 = vpack.c.bf16 %v1353_v56, %v1352_v51  ;;  %v1643_v21 = vld [vmem:[%s3010_s13] ss:$0 sm:$0xff] }
 0x7ee   : > { %v1221_v22 = vrot.slane %v1220_v18, 4  ;;  %v1170_v62 = vpop.permute.xlu0 %1169  ;;  %v1216_v32 = vrot.slane %v1215_v57, 2  ;;  %v1211_v6 = vrot.slane %v1210_v7, 1 }
 0x7ef   : > { %v1183_v58 = vmul.f32 %v1170_v62, %v2703_v40  ;;  %v1190_v40 = vrot.slane %v1189_v53, 1  ;;  %1790 = vmatpush3.bf16.msra.mxu0 %v1789_v50 }
 0x7f0   : > { %v1222_v52 = vadd.f32 %v1221_v22, %v1220_v18  ;;  %v1217_v8 = vadd.f32 %v1216_v32, %v1215_v57  ;;  %v1212_v25 = vadd.f32 %v1211_v6, %v1210_v7  ;;  %1791 = vmatprep.subr.bf16.mxu0 %v2246_v5 }
 0x7f1   : > { %v1227_v36 = vsel %vm545_vm2, %v1183_v58, 0.0  ;;  %v1191_v24 = vadd.f32 %v1190_v40, %v1189_v53 }
 0x7f2   : > { %v1223_v30 = vrot.slane %v1222_v52, 2  ;;  %v1228_v42 = vrot.slane %v1227_v36, 4  ;;  %v1175_v61 = vpop.permute.xlu0 %1174  ;;  %v1218_v12 = vrot.slane %v1217_v8, 1 }
 0x7f3   : > { %v1184_v60 = vmul.f32 %v1175_v61, %v2700_v38  ;;  %v1249_v29 = vsel %vm921_vm5, %v1198_v14, %v1191_v24  ;;  %1793 = vmatpush3.bf16.msra.mxu0 %v1792_v54 }
 0x7f4   : > { %v1224_v63 = vadd.f32 %v1223_v30, %v1222_v52  ;;  %v1229_v1 = vadd.f32 %v1228_v42, %v1227_v36  ;;  %v1219_v28 = vadd.f32 %v1218_v12, %v1217_v8  ;;  %v1250_v34 = vsel %vm923_vm6, %v1205_v23, %v1249_v29 }
 0x7f5   : > { %v1234_v4 = vsel %vm545_vm2, %v1184_v60, 0.0  ;;  %v1251_v37 = vsel %vm925_vm7, %v1212_v25, %v1250_v34  ;;  %v1460_v42 = vsel (!%p1645_p10), %vm545_vm2, %v2657_v55, %v2647_v45 }
 0x7f6   : > { %v1230_v9 = vrot.slane %v1229_v1, 2  ;;  %v1235_v11 = vrot.slane %v1234_v4, 4  ;;  %v1225_v15 = vrot.slane %v1224_v63, 1  ;;  %v1252_v41 = vsel %vm927_vm8, %v1219_v28, %v1251_v37 }
 0x7f8   : > { %v1231_v16 = vadd.f32 %v1230_v9, %v1229_v1  ;;  %v1236_v17 = vadd.f32 %v1235_v11, %v1234_v4  ;;  %v1226_v31 = vadd.f32 %v1225_v15, %v1224_v63 }
 0x7fa   : > { %v1232_v26 = vrot.slane %v1231_v16, 1  ;;  %v1237_v38 = vrot.slane %v1236_v17, 2  ;;  %v1253_v43 = vsel %vm929_vm9, %v1226_v31, %v1252_v41 }
 0x7fc   : > { %v1238_v33 = vadd.f32 %v1237_v38, %v1236_v17  ;;  %v1233_v35 = vadd.f32 %v1232_v26, %v1231_v16 }
 0x7fe   : > { %v1239_v39 = vrot.slane %v1238_v33, 1  ;;  %v1254_v44 = vsel %vm931_vm10, %v1233_v35, %v1253_v43 }
 0x800   : > { %v1240_v13 = vadd.f32 %v1239_v39, %v1238_v33 }
 0x802   : > { %v1255_v46 = vsel %vm933_vm11, %v1240_v13, %v1254_v44 }
 0x803   : > { %v1260_v20 = vsel %vm545_vm2, %v1255_v46, %v1258_v10 }
 0x804   : > { %1739 = vmatmul.mubr.msk.f32.vlgmr.msra.gmra.mrb[2].mxu1 %vm547_vm3, %v1260_v20 }
 0x8d7   : > { %v1345_v57 = vpop.f32.mrb[2].mxu1 }
 0x8d8   : > { %v1346_v2 = vadd.f32 %v1641_v19, %v1345_v57  ;;  %v1740_v18 = vpop.f32.mrb[3].mxu1 }
 0x8da   : > { %1951 = vtanh.f32 %v1346_v2 }
 0x8e4   : > { %v1952_v59 = vpop.eup %1951 }
 0x8e5   : > { %1452 = vst.msk [vmem:[#allocation4] sm:$0xff] %vm545_vm2, %v1952_v59  ;;  %1750 = vmatmul.mubr.msk.f32.vlgmr.msra.gmra.mrb[2].mxu0 %vm545_vm2, %v1952_v59 }
 0x9b8   : > { %v1430_v5 = vpop.f32.mrb[2].mxu0 }
 0x9b9   : > { %v1431_v22 = vadd.f32 %v1643_v21, %v1430_v5  ;;  %v1751_v62 = vpop.f32.mrb[3].mxu0 }
 0x9bb   : > { %1434 = vmax.xlane.f32.xlu0 %v1431_v22 }
 0x9d1   : > { %1448 = vrot.lane.b32.xlu0 %v2647_v45, %s2252_s21 }
 0x9d5   : > { %1457 = vrot.lane.b32.xlu0 (!%p1645_p10), %v1952_v59, %s2253_s24 }
 0xa48   : > { %v1435_v32 = vpop.xlane.xlu0 %1434 }
 0xa49   : > { %v1436_v58 = vsub.f32 %v1431_v22, %v1435_v32 }
 0xa4b   : > { %v1437_v27 = vmul.f32 1.442695, %v1436_v58 }
 0xa4c   : > { %v1449_v52 = vpop.permute.xlu0 %1448 }
 0xa4d   : > { %1953 = vpow2.f32 %v1437_v27  ;;  %1451 = vst.msk [vmem:[#allocation3] sm:$0xff] %vm545_vm2, %v1449_v52 }
 0xa50   : > { %v1458_v61 = vpop.permute.xlu0 (!%p1645_p10), %1457 }
 0xa51   : > { %v1461_v8 = vsel (!%p1645_p10), %vm547_vm3, %v1460_v42, %v1458_v61 }
 0xa52   : > { %v1462_v60 = vsel (!%p1645_p10), %vm568_vm4, %v1461_v8, 0.0 }
 0xa53   : > { %1463 = vst [vmem:[#allocation17] sm:$0xff] (!%p1645_p10), %v1462_v60 }
 0xa57   : > { %v1954_v0 = vpop.eup %1953 }
 0xa58   : > { %1439 = vadd.xlane.f32.xlu1 %v1954_v0 }
 0xae5   : > { %v1440_v36 = vpop.xlane.xlu1 %1439 }
 0xae6   : > { %1955 = vlog2.f32 %v1440_v36 }
 0xaef   : > { %1456 = sbr.rel (%p1645_p10) target bundleno = 2806 (0xaf6), region = 100 }
 0xaf0   : > { %v1956_v53 = vpop.eup %1955 }
 0xaf1   : > { %v1442_v7 = vmul.f32 0.6931472, %v1956_v53 }
 0xaf3   : > { %v1443_v30 = vsub.f32 %v1436_v58, %v1442_v7 }
 0xaf5   : > { %1444 = vst [vmem:[%s2581_s15] sm:$0xff] %v1443_v30 }
 0xaf6 PF: > { %s1647_s22 = sshll.u32 %s2347_s14, 7  ;;  %s3011_s30 = sld [smem:[#allocation28_spill]] }
 0xaf7   : > { %s1478_s18 = sshll.u32 %s2581_s15, 4  ;;  %s1465_s16 = scalar_lea.sflag [#allocation7], %s2559_s11  ;;  %s1479_s18 = int_to_ptr.vmem [resolvable:$true] %s1478_s18 }
 0xaf8   : > { %s2127_s29 = scalar_lea.vmem %s1479_s18, 128  ;;  %p3012_p1 = scmp.ne.s32.totalorder %s2998_s19, 0 }
 0xaf9   : > { %p2128_p12 = scmp.ne.s32.totalorder %s1479_s18, %s2127_s29  ;;  %s2254_s13 = smov [#allocation16]  }
 0xafa   : > { %s2131_s21 = sshll.u32 %s2254_s13, 4  ;;  %s2132_s21 = int_to_ptr.vmem [resolvable:$false] %s2131_s21 }
 0xafb   : > { %p2129_p13 = pnand %p2128_p12, %p3012_p1  ;;  %s2133_s24 = scalar_lea.vmem %s2132_s21, 256 }
 0xafc   : > { %s2907_s1 = scalar_lea.hbm %s3011_s30, %s1647_s22  ;;  %p2134_p5 = scmp.lt.s32.totalorder %s1479_s18, %s2132_s21 }
 0xafd   : > { %p2130_p2 = pneg %p2129_p13  ;;  %p2135_p0 = scmp.lt.s32.totalorder %s2133_s24, %s2127_s29 }
 0xaff   : > { %p2136_p6 = por %p2135_p0, %p2134_p5 }
 0xb01   : > { %p2137_p3 = pnand %p2136_p6, %p2130_p2 }
 0xb03   : > { %2140 = shalt.err (!%p2137_p3)
}
 0xb04   : > { %s2141_s11 = scalar_lea.hbm %s2907_s1, 128  ;;  %s2145_s17 = scalar_lea.hbm %s3011_s30, 512 }
 0xb05   : > { %p2142_p11 = scmp.ne.s32.totalorder %s2907_s1, %s2141_s11  ;;  %p2146_p9 = scmp.lt.u32.totalorder %s2907_s1, %s3011_s30 }
 0xb06   : > { %p2147_p7 = scmp.lt.u32.totalorder %s2145_s17, %s2141_s11  ;;  %p2149_p12 = scmp.lt.u32.totalorder %s2141_s11, %s2907_s1 }
 0xb07   : > { %p2143_p8 = pnand %p2142_p11, %p3012_p1 }
 0xb08   : > { %p2148_p10 = por %p2147_p7, %p2146_p9 }
 0xb09   : > { %p2144_p4 = pneg %p2143_p8 }
 0xb0a   : > { %p2150_p13 = por %p2149_p12, %p2148_p10 }
 0xb0c   : > { %p2151_p2 = pnand %p2150_p13, %p2144_p4 }
 0xb0e   : > { %2154 = shalt.err (!%p2151_p2)
}
 0xb0f   : > { %1816 = dma.vmem_to_hbm [thread:$0]  (%p3012_p1), %s1479_s18, 128, %s2907_s1, %s1465_s16  }
 0xb10   : > { %s2255_s29 = smov [#allocation17]   ;;  %p3013_p0 = scmp.eq.s32.totalorder %s2347_s14, 3 }
 0xb11   : > { %s1489_s21 = sshll.u32 %s2255_s29, 4  ;;  %s1490_s21 = int_to_ptr.vmem [resolvable:$true] %s1489_s21 }
 0xb12   : > { %s2155_s24 = scalar_lea.vmem %s1490_s21, 128  ;;  %p2162_p11 = scmp.lt.s32.totalorder %s1490_s21, %s1490_s21 }
 0xb13   : > { %p2156_p5 = scmp.ne.s32.totalorder %s1490_s21, %s2155_s24  ;;  %p2163_p8 = scmp.lt.s32.totalorder %s2155_s24, %s2155_s24 }
 0xb15   : > { %p2157_p6 = pnand %p2156_p5, %p3013_p0  ;;  %p2164_p9 = por %p2163_p8, %p2162_p11 }
 0xb17   : > { %p2158_p3 = pneg %p2157_p6 }
 0xb19   : > { %p2165_p7 = pnand %p2164_p9, %p2158_p3 }
 0xb1b   : > { %2168 = shalt.err (!%p2165_p7)
}
 0xb1c   : > { %s3014_s22 = sld [smem:[#allocation29_spill]]  ;;  %p3015_p4 = pmov %p3013_p0 }
 0xb22   : > { %s2169_s19 = scalar_lea.hbm %s3014_s22, 128 }
 0xb23   : > { %p2170_p1 = scmp.ne.s32.totalorder %s3014_s22, %s2169_s19  ;;  %p2175_p13 = scmp.lt.u32.totalorder %s2169_s19, %s3014_s22 }
 0xb25   : > { %p2171_p10 = pnand %p2170_p1, %p3015_p4 }
 0xb27   : > { %p2172_p12 = pneg %p2171_p10 }
 0xb29   : > { %p2177_p2 = pnand %p2175_p13, %p2172_p12 }
 0xb2b   : > { %2180 = shalt.err (!%p2177_p2)
}
 0xb2c   : > { %p3016_p5 = pmov %p3013_p0 }
 0xb2e   : > { %1818 = dma.vmem_to_hbm [thread:$0]  (%p3016_p5), %s1490_s21, 128, %s3014_s22, [#allocation18]  }
 0xb2f   : > { %2214 = dma.done.wait (%p3013_p0), [#allocation18], 128   ;;  %p3017_p6 = pmov %p3013_p0 }
 0xb31   : > { %2216 = vsyncadd (%p3017_p6), [#allocation18], 4294967168 }
 0xb32 PF: > { %p1859_p3 = scmp.ge.s32.totalorder %s2235_s28, 2  ;;  %s1505_s29 = sand.u32 1, %s2223_s25  }
 0xb33   : > { %p3018_p11 = scmp.ne.s32.totalorder %s2999_s12, 0  ;;  %s1506_s24 = scalar_lea.sflag [#allocation7], %s1505_s29 }
 0xb35   : > { %p1843_p8 = pnand %p1859_p3, %p3018_p11 }
 0xb37   : > { %2218 = dma.done.wait (!%p1843_p8), %s1506_s24, 128  }
 0xb38   : > { %2220 = vsyncadd (!%p1843_p8), %s1506_s24, 4294967168  ;;  %p31_p9 = scmp.ge.s32.totalorder %s2487_s20, 6   ;;  %s3019_s25 = smov %s2227_s26 }
 0xb39   : > { %s3020_s26 = smov %s2231_s27  ;;  %s3021_s27 = smov %s2499_s23 }
 0xb3a   : > { %s3022_s28 = smov %s2487_s20  ;;  %33 = sbr.rel (!%p31_p9) target bundleno = 15 (0xf), region = 149 }
 0xb41   :  { %1511 = vsyncpa [#allocation6], 1 }
 0xb42   :  { %1513 = vsyncpa [#allocation6 + $0x1], 1 }
 0xb43   :  { %1514 = vsyncpa [#allocation9], 1 }
 0xb44   :  { %1515 = vsyncpa [#allocation12], 1 }
 0xb45   :  { %1516 = vsyncpa [#allocation15], 1 }
 0xb46   :  { %1517 = vsyncpa [#allocation7], 1 }
 0xb47   :  { %1519 = vsyncpa [#allocation7 + $0x1], 1 }
 0xb48   :  { %1520 = vsyncpa [#allocation18], 1 }

</bundles_post_ra>
